<compile_context>
chip_gen: v7x
topology: tpu7x:2x2x1
jax: 0.10.0
libtpu: 0.0.40
codegen_flags: <defaults>
</compile_context>

<pallas_src>
import math

import jax
import jax.numpy as jnp
from jax.experimental import pallas as pl
from jax.experimental.pallas import tpu as pltpu


VMEM_LIMIT_BYTES = 32 * 1024 * 1024


def _tensorcores_per_chip():
    """Best-effort TC-per-chip detection: 2 on v7x, 1 on v5e/v6e."""
    # TODO(synk): switch to a stable core-count field on pltpu.get_tpu_info()
    # when available; device_kind sniffing is a heuristic.
    try:
        kind = jax.devices()[0].device_kind.lower()
    except Exception:
        return 1
    return 2 if "v7" in kind else 1


def _grid_parallel_factor(batch):
    g = _tensorcores_per_chip()
    return g if (g > 1 and batch % g == 0) else 1


# ----------------------------------------------------------------------------
# Shared in-kernel GCN body (traced inside Pallas kernels)
# ----------------------------------------------------------------------------
def _gcn_relu_fitness_body(a, x, w, b_row, wf_row):
    """relu( D^-1/2 (A+I) D^-1/2 @ X @ W + b ) and per-node sigmoid(<out, w_fit>).

    `a` holds a 0/1 adjacency (bf16 or f32). Degree accumulation is forced to
    f32; the message matmul runs bf16 x bf16 with an f32 MXU accumulator.
    """
    Bh, N, C = x.shape
    deg = jnp.sum(a.astype(jnp.float32), axis=2, keepdims=True)       # f32 degrees
    d = jax.lax.rsqrt(deg + 1.0)                                      # (Bh, N, 1)

    # shared X @ W as one flattened matmul feeding the MXU a single tile
    xw = jnp.dot(x.reshape(Bh * N, C), w,
                 preferred_element_type=jnp.float32).reshape(Bh, N, C)
    xw = d * xw
    msg = jnp.einsum('bij,bjc->bic',
                     a.astype(jnp.bfloat16), xw.astype(jnp.bfloat16),
                     preferred_element_type=jnp.float32) + xw

    out = jnp.maximum(d * msg + b_row.reshape(1, 1, C), 0.0)          # bias+relu
    # fitness: VPU multiply + lane reduce, already in the (Bh, N) layout
    fit = jax.nn.sigmoid(jnp.sum(out * wf_row.reshape(1, 1, C), axis=-1))
    return out, fit


# ----------------------------------------------------------------------------
# Pallas kernels
# ----------------------------------------------------------------------------
def gcn_relu_fitness_kernel(a_ref, x_ref, w_ref, b_ref, wf_ref, xo_ref, fit_ref):
    out, fit = _gcn_relu_fitness_body(a_ref[...], x_ref[...], w_ref[...],
                                      b_ref[...], wf_ref[...])
    xo_ref[...] = out
    fit_ref[0] = fit


def pool_gcn_relu_fitness_kernel(pw_ref, p_ref, a_ref, x_ref,
                                 w_ref, b_ref, wf_ref, xo_ref, fit_ref):
    """Fused top-k pooling (one-hot selection matmuls) + GCN + fitness."""
    pw = pw_ref[...]                                   # (Bh, K, N) f32, P * fit
    p = p_ref[...]                                     # (Bh, K, N) bf16, one-hot
    a = a_ref[...]                                     # (Bh, N, N) bf16
    x = x_ref[...]                                     # (Bh, N, C) f32

    # pooled features: rows of X selected and fitness-weighted (exact)
    xp = jnp.einsum('bkn,bnc->bkc', pw, x, preferred_element_type=jnp.float32)
    # pooled adjacency: A[perm, perm] = P @ A @ P^T (0/1 values, exact in bf16)
    pa = jnp.einsum('bkn,bnm->bkm', p, a, preferred_element_type=jnp.float32)
    ap = jnp.einsum('bkm,bjm->bkj', pa.astype(jnp.bfloat16), p,
                    preferred_element_type=jnp.float32)

    out, fit = _gcn_relu_fitness_body(ap, xp, w_ref[...], b_ref[...], wf_ref[...])
    xo_ref[...] = out
    fit_ref[0] = fit


def pool_interactions_kernel(x_ref, pw2_ref, r_ref, w_ref, b_ref, o_ref):
    """Second pooling selection + mean readout + fused decoder (single step)."""
    xq = jnp.einsum('bkn,bnc->bkc', pw2_ref[...], x_ref[...],
                    preferred_element_type=jnp.float32)      # (2B, K2, C)
    h = jnp.mean(xq, axis=1)                                 # (2B, C)
    two_b, C = h.shape
    B = two_b // 2
    # three MXU pushes on static weight slices (no lane-axis concatenate)
    out = jnp.dot(h[:B], w_ref[pl.ds(0, C), :], preferred_element_type=jnp.float32)
    out = out + jnp.dot(h[B:], w_ref[pl.ds(C, C), :],
                        preferred_element_type=jnp.float32)
    out = out + jnp.dot(r_ref[...], w_ref[pl.ds(2 * C, C), :],
                        preferred_element_type=jnp.float32)
    o_ref[...] = out + b_ref[...]


# ----------------------------------------------------------------------------
# pallas_call wrappers
# ----------------------------------------------------------------------------
def gcn_relu_fitness(a, x, w, b, wf):
    Bt, N, _ = a.shape
    C = x.shape[-1]
    G = _grid_parallel_factor(Bt)            # 2 only on 2-TC chips (v7x)
    half = Bt // G
    x_out, fit = pl.pallas_call(
        gcn_relu_fitness_kernel,
        out_shape=(
            jax.ShapeDtypeStruct((Bt, N, C), jnp.float32),
            jax.ShapeDtypeStruct((G, half, N), jnp.float32),
        ),
        grid=(G,),
        in_specs=[
            pl.BlockSpec((half, N, N), lambda g: (g, 0, 0)),
            pl.BlockSpec((half, N, C), lambda g: (g, 0, 0)),
            pl.BlockSpec((C, C), lambda g: (0, 0)),
            pl.BlockSpec((1, C), lambda g: (0, 0)),
            pl.BlockSpec((1, C), lambda g: (0, 0)),
        ],
        out_specs=(
            pl.BlockSpec((half, N, C), lambda g: (g, 0, 0)),
            pl.BlockSpec((1, half, N), lambda g: (g, 0, 0)),
        ),
        compiler_params=pltpu.CompilerParams(
            dimension_semantics=("parallel",),
            vmem_limit_bytes=VMEM_LIMIT_BYTES),
    )(a, x, w, b, wf)
    return x_out, fit.reshape(Bt, N)


def pool_gcn_relu_fitness(pw, p, a, x, w, b, wf):
    Bt, K, N = pw.shape
    C = x.shape[-1]
    G = _grid_parallel_factor(Bt)
    half = Bt // G
    x_out, fit = pl.pallas_call(
        pool_gcn_relu_fitness_kernel,
        out_shape=(
            jax.ShapeDtypeStruct((Bt, K, C), jnp.float32),
            jax.ShapeDtypeStruct((G, half, K), jnp.float32),
        ),
        grid=(G,),
        in_specs=[
            pl.BlockSpec((half, K, N), lambda g: (g, 0, 0)),   # P_w (f32)
            pl.BlockSpec((half, K, N), lambda g: (g, 0, 0)),   # P   (bf16)
            pl.BlockSpec((half, N, N), lambda g: (g, 0, 0)),   # A   (bf16)
            pl.BlockSpec((half, N, C), lambda g: (g, 0, 0)),   # X   (f32)
            pl.BlockSpec((C, C), lambda g: (0, 0)),
            pl.BlockSpec((1, C), lambda g: (0, 0)),
            pl.BlockSpec((1, C), lambda g: (0, 0)),
        ],
        out_specs=(
            pl.BlockSpec((half, K, C), lambda g: (g, 0, 0)),
            pl.BlockSpec((1, half, K), lambda g: (g, 0, 0)),
        ),
        compiler_params=pltpu.CompilerParams(
            dimension_semantics=("parallel",),
            vmem_limit_bytes=VMEM_LIMIT_BYTES),
    )(pw, p, a, x, w, b, wf)
    return x_out, fit.reshape(Bt, K)


def pool_interactions(x, pw2, r, w_cat, b_out):
    Bq = r.shape[0]
    out_dim = w_cat.shape[-1]
    return pl.pallas_call(
        pool_interactions_kernel,
        out_shape=jax.ShapeDtypeStruct((Bq, out_dim), jnp.float32),
    )(x, pw2, r, w_cat, b_out)


# ----------------------------------------------------------------------------
# XLA glue: top-k selection matrices (no gather HLOs, just sort + one-hot)
# ----------------------------------------------------------------------------
# TODO(synk): full ASAP_Pooling (LEConv fitness, soft cluster assignment S,
# S^T A S coarsening) source was not provided; approximated as fitness-weighted
# top-k node pooling expressed as one-hot selection matmuls.
def topk_selection(fit, ratio):
    n = fit.shape[-1]
    k = max(1, int(math.ceil(ratio * n)))
    _, perm = jax.lax.top_k(fit, k)                              # (2B, k)
    p = jax.nn.one_hot(perm, n, dtype=jnp.float32)               # (2B, k, n)
    pw = p * fit[:, None, :]                                     # fold fitness weight
    return p, pw


# ----------------------------------------------------------------------------
# DD_Pre forward
# ----------------------------------------------------------------------------
def dd_pre_forward(params, A1, X1, A2, X2, interaction, ratio1, ratio2):
    B = A1.shape[0]
    # Fuse both drugs into one batch: conv/pool weights are shared.
    # Adjacency values are exactly 0/1 -> carry in bf16 (halves DMA/VMEM bytes).
    A = jnp.concatenate([A1, A2], axis=0).astype(jnp.bfloat16)   # (2B, N, N)
    X = jnp.concatenate([X1, X2], axis=0)                        # (2B, N, C)

    # conv1 (+ pool1 fitness, fused)
    Xh, fit = gcn_relu_fitness(A, X, params["w_conv1"], params["b_conv1"],
                               params["w_fit1"])

    # pool1 selection + conv2 (+ pool2 fitness), pooling matmuls fused in-kernel
    P1, P1w = topk_selection(fit, ratio1)
    Xh2, fit2 = pool_gcn_relu_fitness(P1w, P1.astype(jnp.bfloat16), A, Xh,
                                      params["w_conv2"], params["b_conv2"],
                                      params["w_fit2"])

    # pool2 selection + Interactions decoder (returns `ans`)
    # TODO(synk): `Interactions` module source was not provided; implemented as
    # mean-readout of both pooled drug graphs + relation embedding + linear head.
    _, P2w = topk_selection(fit2, ratio2)
    r = params["rel_emb"][interaction]                           # (B, C)
    ans = pool_interactions(Xh2, P2w, r, params["w_int"], params["b_out"])
    return ans


# ----------------------------------------------------------------------------
# main
# ----------------------------------------------------------------------------
if __name__ == "__main__":
    B, N, C = 2, 16, 32          # batch, nodes per drug graph, in_channels
    RATIO1, RATIO2 = 0.5, 0.5
    NUM_REL, OUT_DIM = 4, 2

    key = jax.random.PRNGKey(0)
    ks = jax.random.split(key, 16)

    # deterministic parameter init (shapes from DD_Pre.__init__)
    params = {
        "w_conv1": 0.1 * jax.random.normal(ks[0], (C, C), jnp.float32),
        "b_conv1": 0.1 * jax.random.normal(ks[1], (1, C), jnp.float32),
        "w_conv2": 0.1 * jax.random.normal(ks[2], (C, C), jnp.float32),
        "b_conv2": 0.1 * jax.random.normal(ks[3], (1, C), jnp.float32),
        "w_fit1":  0.1 * jax.random.normal(ks[4], (1, C), jnp.float32),
        "w_fit2":  0.1 * jax.random.normal(ks[5], (1, C), jnp.float32),
        "rel_emb": 0.1 * jax.random.normal(ks[6], (NUM_REL, C), jnp.float32),
        # decoder weights pre-stacked as [w_h1; w_h2; w_r] -> one (3C, out) slab
        "w_int":   0.1 * jax.random.normal(ks[7], (3 * C, OUT_DIM), jnp.float32),
        "b_out":   0.1 * jax.random.normal(ks[8], (1, OUT_DIM), jnp.float32),
    }

    def rand_adj(k):
        m = (jax.random.uniform(k, (B, N, N)) < 0.3).astype(jnp.float32)
        upper = jnp.triu(m, k=1)
        return upper + jnp.swapaxes(upper, -1, -2)

    A1 = rand_adj(ks[11])                                        # Drug_1_E (dense)
    A2 = rand_adj(ks[12])                                        # Drug_2_E (dense)
    X1 = jax.random.normal(ks[13], (B, N, C), jnp.float32)       # Drug_1_x
    X2 = jax.random.normal(ks[14], (B, N, C), jnp.float32)       # Drug_2_x
    interaction = jax.random.randint(ks[15], (B,), 0, NUM_REL)   # Interaction
    # D1_batch / D2_batch are implicit in the dense [B, N, ...] layout.

    fwd = jax.jit(lambda p, a1, x1, a2, x2, it: dd_pre_forward(
        p, a1, x1, a2, x2, it, RATIO1, RATIO2))
    ans = fwd(params, A1, X1, A2, X2, interaction)
    jax.block_until_ready(ans)
    assert ans.shape == (B, OUT_DIM)
    print("KERNEL_OK")
</pallas_src>

<mosaic_0001>
module attributes {stable_mosaic.version = 11 : i64} {
  func.func @gcn_relu_fitness_kernel(%arg0: i32, %arg1: memref<4x16x16xbf16, #tpu.memory_space<vmem>>, %arg2: memref<4x16x32xf32, #tpu.memory_space<vmem>>, %arg3: memref<32x32xf32, #tpu.memory_space<vmem>>, %arg4: memref<1x32xf32, #tpu.memory_space<vmem>>, %arg5: memref<1x32xf32, #tpu.memory_space<vmem>>, %arg6: memref<4x16x32xf32, #tpu.memory_space<vmem>>, %arg7: memref<1x4x16xf32, #tpu.memory_space<vmem>>) attributes {dimension_semantics = [#tpu.dimension_semantics<parallel>], iteration_bounds = array<i64: 1>, scalar_prefetch = 0 : i64, scratch_operands = 0 : i64, tpu.core_type = #tpu.core_type<tc>, window_params = [{transform_indices = @transform_0, window_bounds = array<i64: 4, 16, 16>}, {transform_indices = @transform_1, window_bounds = array<i64: 4, 16, 32>}, {pipeline_mode = #tpu.pipeline_mode<synchronous>, transform_indices = @transform_2, window_bounds = array<i64: 32, 32>}, {pipeline_mode = #tpu.pipeline_mode<synchronous>, transform_indices = @transform_3, window_bounds = array<i64: 1, 32>}, {pipeline_mode = #tpu.pipeline_mode<synchronous>, transform_indices = @transform_4, window_bounds = array<i64: 1, 32>}, {transform_indices = @transform_5, window_bounds = array<i64: 4, 16, 32>}, {transform_indices = @transform_6, window_bounds = array<i64: 1, 4, 16>}]} {
    %c0 = arith.constant 0 : index
    %c0_0 = arith.constant 0 : index
    %c0_1 = arith.constant 0 : index
    %0 = vector.load %arg1[%c0, %c0_0, %c0_1] : memref<4x16x16xbf16, #tpu.memory_space<vmem>>, vector<4x16x16xbf16>
    %c0_2 = arith.constant 0 : index
    %c0_3 = arith.constant 0 : index
    %c0_4 = arith.constant 0 : index
    %1 = vector.load %arg2[%c0_2, %c0_3, %c0_4] : memref<4x16x32xf32, #tpu.memory_space<vmem>>, vector<4x16x32xf32>
    %c0_5 = arith.constant 0 : index
    %c0_6 = arith.constant 0 : index
    %2 = vector.load %arg3[%c0_5, %c0_6] : memref<32x32xf32, #tpu.memory_space<vmem>>, vector<32x32xf32>
    %c0_7 = arith.constant 0 : index
    %c0_8 = arith.constant 0 : index
    %3 = vector.load %arg4[%c0_7, %c0_8] : memref<1x32xf32, #tpu.memory_space<vmem>>, vector<1x32xf32>
    %c0_9 = arith.constant 0 : index
    %c0_10 = arith.constant 0 : index
    %4 = vector.load %arg5[%c0_9, %c0_10] : memref<1x32xf32, #tpu.memory_space<vmem>>, vector<1x32xf32>
    %5 = arith.extf %0 : vector<4x16x16xbf16> to vector<4x16x16xf32>
    %cst = arith.constant dense<0.000000e+00> : vector<4x16xf32>
    %6 = vector.multi_reduction <add>, %5, %cst [2] : vector<4x16x16xf32> to vector<4x16xf32>
    %7 = vector.shape_cast %6 : vector<4x16xf32> to vector<4x16x1xf32>
    %cst_11 = arith.constant 1.000000e+00 : f32
    %8 = vector.broadcast %cst_11 : f32 to vector<4x16x1xf32>
    %9 = arith.addf %7, %8 : vector<4x16x1xf32>
    %10 = math.rsqrt %9 : vector<4x16x1xf32>
    %11 = vector.shape_cast %1 : vector<4x16x32xf32> to vector<64x32xf32>
    %cst_12 = arith.constant dense<0.000000e+00> : vector<64x32xf32>
    %12 = tpu.matmul %11, %2, %cst_12 {dimension_numbers = #tpu.dot_dimension_numbers<[1], [0], [0], [1], [0, 0, 1, 1], [], []>} : vector<64x32xf32>, vector<32x32xf32>, vector<64x32xf32> -> vector<64x32xf32>
    %13 = vector.shape_cast %12 : vector<64x32xf32> to vector<4x16x32xf32>
    %14 = vector.broadcast %10 : vector<4x16x1xf32> to vector<4x16x32xf32>
    %15 = arith.mulf %14, %13 : vector<4x16x32xf32>
    %16 = arith.truncf %15 : vector<4x16x32xf32> to vector<4x16x32xbf16>
    "tpu.trace_start"() <{level = 10 : i32, message = "bij,bjc->bic"}> : () -> ()
    %cst_13 = arith.constant dense<0.000000e+00> : vector<4x16x32xf32>
    %17 = tpu.matmul %0, %16, %cst_13 {dimension_numbers = #tpu.dot_dimension_numbers<[2], [1], [1], [2], [0, 0, 0, 1, 1, 2], [0], [0]>} : vector<4x16x16xbf16>, vector<4x16x32xbf16>, vector<4x16x32xf32> -> vector<4x16x32xf32>
    "tpu.trace_stop"() : () -> ()
    %18 = arith.addf %17, %15 : vector<4x16x32xf32>
    %19 = vector.broadcast %10 : vector<4x16x1xf32> to vector<4x16x32xf32>
    %20 = arith.mulf %19, %18 : vector<4x16x32xf32>
    %21 = vector.shape_cast %3 : vector<1x32xf32> to vector<1x1x32xf32>
    %22 = vector.broadcast %21 : vector<1x1x32xf32> to vector<4x16x32xf32>
    %23 = arith.addf %20, %22 : vector<4x16x32xf32>
    %cst_14 = arith.constant 0.000000e+00 : f32
    %24 = vector.broadcast %cst_14 : f32 to vector<4x16x32xf32>
    %25 = arith.maximumf %23, %24 : vector<4x16x32xf32>
    %26 = vector.shape_cast %4 : vector<1x32xf32> to vector<1x1x32xf32>
    %27 = vector.broadcast %26 : vector<1x1x32xf32> to vector<4x16x32xf32>
    %28 = arith.mulf %25, %27 : vector<4x16x32xf32>
    %cst_15 = arith.constant dense<0.000000e+00> : vector<4x16xf32>
    %29 = vector.multi_reduction <add>, %28, %cst_15 [2] : vector<4x16x32xf32> to vector<4x16xf32>
    %30 = arith.negf %29 : vector<4x16xf32>
    %31 = math.exp %30 : vector<4x16xf32>
    %cst_16 = arith.constant 1.000000e+00 : f32
    %32 = vector.broadcast %cst_16 : f32 to vector<4x16xf32>
    %33 = arith.addf %32, %31 : vector<4x16xf32>
    %34 = arith.divf %32, %33 : vector<4x16xf32>
    %c0_17 = arith.constant 0 : index
    %c0_18 = arith.constant 0 : index
    %c0_19 = arith.constant 0 : index
    %35 = vector.load %arg6[%c0_17, %c0_18, %c0_19] : memref<4x16x32xf32, #tpu.memory_space<vmem>>, vector<4x16x32xf32>
    tpu.vector_store %arg6[%c0_17, %c0_18, %c0_19], %25 {strides = array<i32>} : memref<4x16x32xf32, #tpu.memory_space<vmem>>, vector<4x16x32xf32>,
    %c0_20 = arith.constant 0 : index
    %c0_21 = arith.constant 0 : index
    %c0_22 = arith.constant 0 : index
    %36 = vector.load %arg7[%c0_20, %c0_21, %c0_22] : memref<1x4x16xf32, #tpu.memory_space<vmem>>, vector<1x4x16xf32>
    %37 = vector.shape_cast %36 : vector<1x4x16xf32> to vector<4x16xf32>
    %38 = vector.shape_cast %34 : vector<4x16xf32> to vector<1x4x16xf32>
    tpu.vector_store %arg7[%c0_20, %c0_21, %c0_22], %38 {strides = array<i32>} : memref<1x4x16xf32, #tpu.memory_space<vmem>>, vector<1x4x16xf32>,
    return
  }
  func.func @transform_0(%arg0: i32) -> (i32, i32, i32) {
    %c0_i32 = arith.constant 0 : i32
    %c0_i32_0 = arith.constant 0 : i32
    %c0_i32_1 = arith.constant 0 : i32
    return %arg0, %c0_i32, %c0_i32_0 : i32, i32, i32
  }
  func.func @transform_1(%arg0: i32) -> (i32, i32, i32) {
    %c0_i32 = arith.constant 0 : i32
    %c0_i32_0 = arith.constant 0 : i32
    %c0_i32_1 = arith.constant 0 : i32
    return %arg0, %c0_i32, %c0_i32_0 : i32, i32, i32
  }
  func.func @transform_2(%arg0: i32) -> (i32, i32) {
    %c0_i32 = arith.constant 0 : i32
    %c0_i32_0 = arith.constant 0 : i32
    %c0_i32_1 = arith.constant 0 : i32
    return %c0_i32, %c0_i32_0 : i32, i32
  }
  func.func @transform_3(%arg0: i32) -> (i32, i32) {
    %c0_i32 = arith.constant 0 : i32
    %c0_i32_0 = arith.constant 0 : i32
    %c0_i32_1 = arith.constant 0 : i32
    return %c0_i32, %c0_i32_0 : i32, i32
  }
  func.func @transform_4(%arg0: i32) -> (i32, i32) {
    %c0_i32 = arith.constant 0 : i32
    %c0_i32_0 = arith.constant 0 : i32
    %c0_i32_1 = arith.constant 0 : i32
    return %c0_i32, %c0_i32_0 : i32, i32
  }
  func.func @transform_5(%arg0: i32) -> (i32, i32, i32) {
    %c0_i32 = arith.constant 0 : i32
    %c0_i32_0 = arith.constant 0 : i32
    %c0_i32_1 = arith.constant 0 : i32
    return %arg0, %c0_i32, %c0_i32_0 : i32, i32, i32
  }
  func.func @transform_6(%arg0: i32) -> (i32, i32, i32) {
    %c0_i32 = arith.constant 0 : i32
    %c0_i32_0 = arith.constant 0 : i32
    %c0_i32_1 = arith.constant 0 : i32
    return %arg0, %c0_i32, %c0_i32_0 : i32, i32, i32
  }
}

module attributes {stable_mosaic.version = 11 : i64} {
  func.func @pool_gcn_relu_fitness_kernel(%arg0: i32, %arg1: memref<4x8x16xf32, #tpu.memory_space<vmem>>, %arg2: memref<4x8x16xbf16, #tpu.memory_space<vmem>>, %arg3: memref<4x16x16xbf16, #tpu.memory_space<vmem>>, %arg4: memref<4x16x32xf32, #tpu.memory_space<vmem>>, %arg5: memref<32x32xf32, #tpu.memory_space<vmem>>, %arg6: memref<1x32xf32, #tpu.memory_space<vmem>>, %arg7: memref<1x32xf32, #tpu.memory_space<vmem>>, %arg8: memref<4x8x32xf32, #tpu.memory_space<vmem>>, %arg9: memref<1x4x8xf32, #tpu.memory_space<vmem>>) attributes {dimension_semantics = [#tpu.dimension_semantics<parallel>], iteration_bounds = array<i64: 1>, scalar_prefetch = 0 : i64, scratch_operands = 0 : i64, tpu.core_type = #tpu.core_type<tc>, window_params = [{transform_indices = @transform_0, window_bounds = array<i64: 4, 8, 16>}, {transform_indices = @transform_1, window_bounds = array<i64: 4, 8, 16>}, {transform_indices = @transform_2, window_bounds = array<i64: 4, 16, 16>}, {transform_indices = @transform_3, window_bounds = array<i64: 4, 16, 32>}, {pipeline_mode = #tpu.pipeline_mode<synchronous>, transform_indices = @transform_4, window_bounds = array<i64: 32, 32>}, {pipeline_mode = #tpu.pipeline_mode<synchronous>, transform_indices = @transform_5, window_bounds = array<i64: 1, 32>}, {pipeline_mode = #tpu.pipeline_mode<synchronous>, transform_indices = @transform_6, window_bounds = array<i64: 1, 32>}, {transform_indices = @transform_7, window_bounds = array<i64: 4, 8, 32>}, {transform_indices = @transform_8, window_bounds = array<i64: 1, 4, 8>}]} {
    %c0 = arith.constant 0 : index
    %c0_0 = arith.constant 0 : index
    %c0_1 = arith.constant 0 : index
    %0 = vector.load %arg1[%c0, %c0_0, %c0_1] : memref<4x8x16xf32, #tpu.memory_space<vmem>>, vector<4x8x16xf32>
    %c0_2 = arith.constant 0 : index
    %c0_3 = arith.constant 0 : index
    %c0_4 = arith.constant 0 : index
    %1 = vector.load %arg2[%c0_2, %c0_3, %c0_4] : memref<4x8x16xbf16, #tpu.memory_space<vmem>>, vector<4x8x16xbf16>
    %c0_5 = arith.constant 0 : index
    %c0_6 = arith.constant 0 : index
    %c0_7 = arith.constant 0 : index
    %2 = vector.load %arg3[%c0_5, %c0_6, %c0_7] : memref<4x16x16xbf16, #tpu.memory_space<vmem>>, vector<4x16x16xbf16>
    %c0_8 = arith.constant 0 : index
    %c0_9 = arith.constant 0 : index
    %c0_10 = arith.constant 0 : index
    %3 = vector.load %arg4[%c0_8, %c0_9, %c0_10] : memref<4x16x32xf32, #tpu.memory_space<vmem>>, vector<4x16x32xf32>
    "tpu.trace_start"() <{level = 10 : i32, message = "bkn,bnc->bkc"}> : () -> ()
    %cst = arith.constant dense<0.000000e+00> : vector<4x8x32xf32>
    %4 = tpu.matmul %0, %3, %cst {dimension_numbers = #tpu.dot_dimension_numbers<[2], [1], [1], [2], [0, 0, 0, 1, 1, 2], [0], [0]>} : vector<4x8x16xf32>, vector<4x16x32xf32>, vector<4x8x32xf32> -> vector<4x8x32xf32>
    "tpu.trace_stop"() : () -> ()
    "tpu.trace_start"() <{level = 10 : i32, message = "bkn,bnm->bkm"}> : () -> ()
    %cst_11 = arith.constant dense<0.000000e+00> : vector<4x8x16xf32>
    %5 = tpu.matmul %1, %2, %cst_11 {dimension_numbers = #tpu.dot_dimension_numbers<[2], [1], [1], [2], [0, 0, 0, 1, 1, 2], [0], [0]>} : vector<4x8x16xbf16>, vector<4x16x16xbf16>, vector<4x8x16xf32> -> vector<4x8x16xf32>
    "tpu.trace_stop"() : () -> ()
    %6 = arith.truncf %5 : vector<4x8x16xf32> to vector<4x8x16xbf16>
    "tpu.trace_start"() <{level = 10 : i32, message = "bkm,bjm->bkj"}> : () -> ()
    %cst_12 = arith.constant dense<0.000000e+00> : vector<4x8x8xf32>
    %7 = tpu.matmul %6, %1, %cst_12 {dimension_numbers = #tpu.dot_dimension_numbers<[2], [2], [1], [1], [0, 0, 0, 1, 1, 1], [0], [0]>} : vector<4x8x16xbf16>, vector<4x8x16xbf16>, vector<4x8x8xf32> -> vector<4x8x8xf32>
    "tpu.trace_stop"() : () -> ()
    %c0_13 = arith.constant 0 : index
    %c0_14 = arith.constant 0 : index
    %8 = vector.load %arg5[%c0_13, %c0_14] : memref<32x32xf32, #tpu.memory_space<vmem>>, vector<32x32xf32>
    %c0_15 = arith.constant 0 : index
    %c0_16 = arith.constant 0 : index
    %9 = vector.load %arg6[%c0_15, %c0_16] : memref<1x32xf32, #tpu.memory_space<vmem>>, vector<1x32xf32>
    %c0_17 = arith.constant 0 : index
    %c0_18 = arith.constant 0 : index
    %10 = vector.load %arg7[%c0_17, %c0_18] : memref<1x32xf32, #tpu.memory_space<vmem>>, vector<1x32xf32>
    %cst_19 = arith.constant dense<0.000000e+00> : vector<4x8xf32>
    %11 = vector.multi_reduction <add>, %7, %cst_19 [2] : vector<4x8x8xf32> to vector<4x8xf32>
    %12 = vector.shape_cast %11 : vector<4x8xf32> to vector<4x8x1xf32>
    %cst_20 = arith.constant 1.000000e+00 : f32
    %13 = vector.broadcast %cst_20 : f32 to vector<4x8x1xf32>
    %14 = arith.addf %12, %13 : vector<4x8x1xf32>
    %15 = math.rsqrt %14 : vector<4x8x1xf32>
    %16 = vector.shape_cast %4 : vector<4x8x32xf32> to vector<32x32xf32>
    %cst_21 = arith.constant dense<0.000000e+00> : vector<32x32xf32>
    %17 = tpu.matmul %16, %8, %cst_21 {dimension_numbers = #tpu.dot_dimension_numbers<[1], [0], [0], [1], [0, 0, 1, 1], [], []>} : vector<32x32xf32>, vector<32x32xf32>, vector<32x32xf32> -> vector<32x32xf32>
    %18 = vector.shape_cast %17 : vector<32x32xf32> to vector<4x8x32xf32>
    %19 = vector.broadcast %15 : vector<4x8x1xf32> to vector<4x8x32xf32>
    %20 = arith.mulf %19, %18 : vector<4x8x32xf32>
    %21 = arith.truncf %7 : vector<4x8x8xf32> to vector<4x8x8xbf16>
    %22 = arith.truncf %20 : vector<4x8x32xf32> to vector<4x8x32xbf16>
    "tpu.trace_start"() <{level = 10 : i32, message = "bij,bjc->bic"}> : () -> ()
    %cst_22 = arith.constant dense<0.000000e+00> : vector<4x8x32xf32>
    %23 = tpu.matmul %21, %22, %cst_22 {dimension_numbers = #tpu.dot_dimension_numbers<[2], [1], [1], [2], [0, 0, 0, 1, 1, 2], [0], [0]>} : vector<4x8x8xbf16>, vector<4x8x32xbf16>, vector<4x8x32xf32> -> vector<4x8x32xf32>
    "tpu.trace_stop"() : () -> ()
    %24 = arith.addf %23, %20 : vector<4x8x32xf32>
    %25 = vector.broadcast %15 : vector<4x8x1xf32> to vector<4x8x32xf32>
    %26 = arith.mulf %25, %24 : vector<4x8x32xf32>
    %27 = vector.shape_cast %9 : vector<1x32xf32> to vector<1x1x32xf32>
    %28 = vector.broadcast %27 : vector<1x1x32xf32> to vector<4x8x32xf32>
    %29 = arith.addf %26, %28 : vector<4x8x32xf32>
    %cst_23 = arith.constant 0.000000e+00 : f32
    %30 = vector.broadcast %cst_23 : f32 to vector<4x8x32xf32>
    %31 = arith.maximumf %29, %30 : vector<4x8x32xf32>
    %32 = vector.shape_cast %10 : vector<1x32xf32> to vector<1x1x32xf32>
    %33 = vector.broadcast %32 : vector<1x1x32xf32> to vector<4x8x32xf32>
    %34 = arith.mulf %31, %33 : vector<4x8x32xf32>
    %cst_24 = arith.constant dense<0.000000e+00> : vector<4x8xf32>
    %35 = vector.multi_reduction <add>, %34, %cst_24 [2] : vector<4x8x32xf32> to vector<4x8xf32>
    %36 = arith.negf %35 : vector<4x8xf32>
    %37 = math.exp %36 : vector<4x8xf32>
    %cst_25 = arith.constant 1.000000e+00 : f32
    %38 = vector.broadcast %cst_25 : f32 to vector<4x8xf32>
    %39 = arith.addf %38, %37 : vector<4x8xf32>
    %40 = arith.divf %38, %39 : vector<4x8xf32>
    %c0_26 = arith.constant 0 : index
    %c0_27 = arith.constant 0 : index
    %c0_28 = arith.constant 0 : index
    %41 = vector.load %arg8[%c0_26, %c0_27, %c0_28] : memref<4x8x32xf32, #tpu.memory_space<vmem>>, vector<4x8x32xf32>
    tpu.vector_store %arg8[%c0_26, %c0_27, %c0_28], %31 {strides = array<i32>} : memref<4x8x32xf32, #tpu.memory_space<vmem>>, vector<4x8x32xf32>,
    %c0_29 = arith.constant 0 : index
    %c0_30 = arith.constant 0 : index
    %c0_31 = arith.constant 0 : index
    %42 = vector.load %arg9[%c0_29, %c0_30, %c0_31] : memref<1x4x8xf32, #tpu.memory_space<vmem>>, vector<1x4x8xf32>
    %43 = vector.shape_cast %42 : vector<1x4x8xf32> to vector<4x8xf32>
    %44 = vector.shape_cast %40 : vector<4x8xf32> to vector<1x4x8xf32>
    tpu.vector_store %arg9[%c0_29, %c0_30, %c0_31], %44 {strides = array<i32>} : memref<1x4x8xf32, #tpu.memory_space<vmem>>, vector<1x4x8xf32>,
    return
  }
  func.func @transform_0(%arg0: i32) -> (i32, i32, i32) {
    %c0_i32 = arith.constant 0 : i32
    %c0_i32_0 = arith.constant 0 : i32
    %c0_i32_1 = arith.constant 0 : i32
    return %arg0, %c0_i32, %c0_i32_0 : i32, i32, i32
  }
  func.func @transform_1(%arg0: i32) -> (i32, i32, i32) {
    %c0_i32 = arith.constant 0 : i32
    %c0_i32_0 = arith.constant 0 : i32
    %c0_i32_1 = arith.constant 0 : i32
    return %arg0, %c0_i32, %c0_i32_0 : i32, i32, i32
  }
  func.func @transform_2(%arg0: i32) -> (i32, i32, i32) {
    %c0_i32 = arith.constant 0 : i32
    %c0_i32_0 = arith.constant 0 : i32
    %c0_i32_1 = arith.constant 0 : i32
    return %arg0, %c0_i32, %c0_i32_0 : i32, i32, i32
  }
  func.func @transform_3(%arg0: i32) -> (i32, i32, i32) {
    %c0_i32 = arith.constant 0 : i32
    %c0_i32_0 = arith.constant 0 : i32
    %c0_i32_1 = arith.constant 0 : i32
    return %arg0, %c0_i32, %c0_i32_0 : i32, i32, i32
  }
  func.func @transform_4(%arg0: i32) -> (i32, i32) {
    %c0_i32 = arith.constant 0 : i32
    %c0_i32_0 = arith.constant 0 : i32
    %c0_i32_1 = arith.constant 0 : i32
    return %c0_i32, %c0_i32_0 : i32, i32
  }
  func.func @transform_5(%arg0: i32) -> (i32, i32) {
    %c0_i32 = arith.constant 0 : i32
    %c0_i32_0 = arith.constant 0 : i32
    %c0_i32_1 = arith.constant 0 : i32
    return %c0_i32, %c0_i32_0 : i32, i32
  }
  func.func @transform_6(%arg0: i32) -> (i32, i32) {
    %c0_i32 = arith.constant 0 : i32
    %c0_i32_0 = arith.constant 0 : i32
    %c0_i32_1 = arith.constant 0 : i32
    return %c0_i32, %c0_i32_0 : i32, i32
  }
  func.func @transform_7(%arg0: i32) -> (i32, i32, i32) {
    %c0_i32 = arith.constant 0 : i32
    %c0_i32_0 = arith.constant 0 : i32
    %c0_i32_1 = arith.constant 0 : i32
    return %arg0, %c0_i32, %c0_i32_0 : i32, i32, i32
  }
  func.func @transform_8(%arg0: i32) -> (i32, i32, i32) {
    %c0_i32 = arith.constant 0 : i32
    %c0_i32_0 = arith.constant 0 : i32
    %c0_i32_1 = arith.constant 0 : i32
    return %arg0, %c0_i32, %c0_i32_0 : i32, i32, i32
  }
}

module attributes {stable_mosaic.version = 11 : i64} {
  func.func @pool_interactions_kernel(%arg0: memref<4x8x32xf32, #tpu.memory_space<vmem>>, %arg1: memref<4x4x8xf32, #tpu.memory_space<vmem>>, %arg2: memref<2x32xf32, #tpu.memory_space<vmem>>, %arg3: memref<96x2xf32, #tpu.memory_space<vmem>>, %arg4: memref<1x2xf32, #tpu.memory_space<vmem>>, %arg5: memref<2x2xf32, #tpu.memory_space<vmem>>) attributes {dimension_semantics = [], scalar_prefetch = 0 : i64, scratch_operands = 0 : i64, tpu.core_type = #tpu.core_type<tc>} {
    %c0 = arith.constant 0 : index
    %c0_0 = arith.constant 0 : index
    %c0_1 = arith.constant 0 : index
    %0 = vector.load %arg1[%c0, %c0_0, %c0_1] : memref<4x4x8xf32, #tpu.memory_space<vmem>>, vector<4x4x8xf32>
    %c0_2 = arith.constant 0 : index
    %c0_3 = arith.constant 0 : index
    %c0_4 = arith.constant 0 : index
    %1 = vector.load %arg0[%c0_2, %c0_3, %c0_4] : memref<4x8x32xf32, #tpu.memory_space<vmem>>, vector<4x8x32xf32>
    "tpu.trace_start"() <{level = 10 : i32, message = "bkn,bnc->bkc"}> : () -> ()
    %cst = arith.constant dense<0.000000e+00> : vector<4x4x32xf32>
    %2 = tpu.matmul %0, %1, %cst {dimension_numbers = #tpu.dot_dimension_numbers<[2], [1], [1], [2], [0, 0, 0, 1, 1, 2], [0], [0]>} : vector<4x4x8xf32>, vector<4x8x32xf32>, vector<4x4x32xf32> -> vector<4x4x32xf32>
    "tpu.trace_stop"() : () -> ()
    %cst_5 = arith.constant dense<0.000000e+00> : vector<4x32xf32>
    %3 = vector.multi_reduction <add>, %2, %cst_5 [1] : vector<4x4x32xf32> to vector<4x32xf32>
    %cst_6 = arith.constant 4.000000e+00 : f32
    %4 = vector.broadcast %cst_6 : f32 to vector<4x32xf32>
    %5 = arith.divf %3, %4 : vector<4x32xf32>
    %6 = vector.extract_strided_slice %5 {offsets = [0, 0], sizes = [2, 32], strides = [1, 1]} : vector<4x32xf32> to vector<2x32xf32>
    %c0_7 = arith.constant 0 : index
    %c0_8 = arith.constant 0 : index
    %7 = vector.load %arg3[%c0_7, %c0_8] : memref<96x2xf32, #tpu.memory_space<vmem>>, vector<32x2xf32>
    %cst_9 = arith.constant dense<0.000000e+00> : vector<2x2xf32>
    %8 = tpu.matmul %6, %7, %cst_9 {dimension_numbers = #tpu.dot_dimension_numbers<[1], [0], [0], [1], [0, 0, 1, 1], [], []>} : vector<2x32xf32>, vector<32x2xf32>, vector<2x2xf32> -> vector<2x2xf32>
    %9 = vector.extract_strided_slice %5 {offsets = [2, 0], sizes = [2, 32], strides = [1, 1]} : vector<4x32xf32> to vector<2x32xf32>
    %c32 = arith.constant 32 : index
    %c0_10 = arith.constant 0 : index
    %10 = vector.load %arg3[%c32, %c0_10] : memref<96x2xf32, #tpu.memory_space<vmem>>, vector<32x2xf32>
    %cst_11 = arith.constant dense<0.000000e+00> : vector<2x2xf32>
    %11 = tpu.matmul %9, %10, %cst_11 {dimension_numbers = #tpu.dot_dimension_numbers<[1], [0], [0], [1], [0, 0, 1, 1], [], []>} : vector<2x32xf32>, vector<32x2xf32>, vector<2x2xf32> -> vector<2x2xf32>
    %12 = arith.addf %8, %11 : vector<2x2xf32>
    %c0_12 = arith.constant 0 : index
    %c0_13 = arith.constant 0 : index
    %13 = vector.load %arg2[%c0_12, %c0_13] : memref<2x32xf32, #tpu.memory_space<vmem>>, vector<2x32xf32>
    %c64 = arith.constant 64 : index
    %c0_14 = arith.constant 0 : index
    %14 = vector.load %arg3[%c64, %c0_14] : memref<96x2xf32, #tpu.memory_space<vmem>>, vector<32x2xf32>
    %cst_15 = arith.constant dense<0.000000e+00> : vector<2x2xf32>
    %15 = tpu.matmul %13, %14, %cst_15 {dimension_numbers = #tpu.dot_dimension_numbers<[1], [0], [0], [1], [0, 0, 1, 1], [], []>} : vector<2x32xf32>, vector<32x2xf32>, vector<2x2xf32> -> vector<2x2xf32>
    %16 = arith.addf %12, %15 : vector<2x2xf32>
    %c0_16 = arith.constant 0 : index
    %c0_17 = arith.constant 0 : index
    %17 = vector.load %arg4[%c0_16, %c0_17] : memref<1x2xf32, #tpu.memory_space<vmem>>, vector<1x2xf32>
    %18 = vector.broadcast %17 : vector<1x2xf32> to vector<2x2xf32>
    %19 = arith.addf %16, %18 : vector<2x2xf32>
    %c0_18 = arith.constant 0 : index
    %c0_19 = arith.constant 0 : index
    %20 = vector.load %arg5[%c0_18, %c0_19] : memref<2x2xf32, #tpu.memory_space<vmem>>, vector<2x2xf32>
    tpu.vector_store %arg5[%c0_18, %c0_19], %19 {strides = array<i32>} : memref<2x2xf32, #tpu.memory_space<vmem>>, vector<2x2xf32>,
    return
  }
}

</mosaic_0001>

<bundles_post_ra>
// kernel: _lambda_.3
= control target key start
LH: loop header
LB: loop body
LE: loop exit
PB: predicated region body
PF: predicated region fallthrough
CT: control target
= control target key end

     0   :  { %vm94_vm0 = vcmask 261120   ;;  %vm53_vm1 = vcmask 130048   ;;  %v777_v34 = vmov 0.0   ;;  %vm778_vm2 = vmmov 0   ;;  %s1001_s2 = inlined_call_operand.vmem [shape: f32[32,32], index: 2, kind: input, shape index: {}]   ;;  %s1002_s1 = inlined_call_operand.vmem [shape: f32[4,16,32], index: 1, kind: input, shape index: {}]   ;;  %s1003_s0 = inlined_call_operand.vmem [shape: bf16[4,16,16], index: 0, kind: input, shape index: {}]   ;;  %s1004_s3 = inlined_call_operand.vmem [shape: f32[1,32], index: 3, kind: input, shape index: {}]   ;;  %s1005_s4 = inlined_call_operand.vmem [shape: f32[1,32], index: 4, kind: input, shape index: {}]   ;;  %s1006_s5 = inlined_call_operand.vmem [shape: f32[4,16,32], index: 5, kind: output, shape index: {0}]   ;;  %s1007_s6 = inlined_call_operand.vmem [shape: f32[1,4,16], index: 6, kind: output, shape index: {1}]  }
   0x1   :  { %v39_v0 = vld [vmem:[%s1001_s2] sm:$0xff]  ;;  %v40_v1 = vld [vmem:[%s1001_s2 + $0x8] sm:$0xff]  ;;  %v41_v2 = vld [vmem:[%s1001_s2 + $0x10] sm:$0xff]  ;;  %687 = vmatprep.subr.bf16.mxu1 %v777_v34  ;;  %689 = vmatprep.mubr.msk.bf16.mxu1 %vm778_vm2, %v777_v34  ;;  %vm575_vm3 = vcmask 130112   ;;  %vm604_vm4 = vcmask 1041409   ;;  %vm606_vm5 = vcmask 1042434  }
   0x2   :  { %v711_v3 = vpack.c.bf16 %v40_v1, %v39_v0  ;;  %v42_v4 = vld [vmem:[%s1001_s2 + $0x18] sm:$0xff]  ;;  %v31_v5 = vld [vmem:[%s1002_s1] sm:$0xff]  ;;  %v838_v8 = vld [vmem:[%s1003_s0 + $0x8] sm:$0xff]   ;;  %vm608_vm6 = vcmask 1043459   ;;  %vm611_vm7 = vcmask 125952  }
   0x3   :  { %v715_v6 = vpack.c.bf16 %v42_v4, %v41_v2  ;;  %675 = vmatprep.mubr.msk.f32.mxu0 %vm94_vm0, %v31_v5  ;;  %v833_v7 = vld [vmem:[%s1003_s0] sm:$0xff]   ;;  %v47_v10 = vunpack.c.l.bf16 %v838_v8  ;;  %v48_v12 = vunpack.c.h.bf16 %v838_v8  ;;  %v847_v13 = vld [vmem:[%s1003_s0 + $0x10] sm:$0xff]   ;;  %v32_v16 = vld [vmem:[%s1002_s1 + $0x8] sm:$0xff] }
   0x4   :  { %712 = vmatprep.subr.bf16.mxu0 %v711_v3  ;;  %v45_v9 = vunpack.c.l.bf16 %v833_v7  ;;  %v46_v11 = vunpack.c.h.bf16 %v833_v7  ;;  %v33_v17 = vld [vmem:[%s1002_s1 + $0x10] sm:$0xff]  ;;  %v49_v19 = vunpack.c.l.bf16 %v847_v13  ;;  %v50_v21 = vunpack.c.h.bf16 %v847_v13  ;;  %v864_v22 = vld [vmem:[%s1003_s0 + $0x18] sm:$0xff]   ;;  %v35_v24 = vld [vmem:[%s1002_s1 + $0x20] sm:$0xff] }
   0x5   :  { %714 = vmatpush3.bf16.msra.mxu0 %v711_v3  ;;  %v60_v15 = vsel %vm53_vm1, %v47_v10, 0.0  ;;  %v63_v20 = vsel %vm53_vm1, %v48_v12, 0.0  ;;  %v34_v23 = vld [vmem:[%s1002_s1 + $0x18] sm:$0xff]  ;;  %v51_v26 = vunpack.c.l.bf16 %v864_v22  ;;  %v52_v28 = vunpack.c.h.bf16 %v864_v22  ;;  %v36_v29 = vld [vmem:[%s1002_s1 + $0x28] sm:$0xff]  ;;  %v37_v30 = vld [vmem:[%s1002_s1 + $0x30] sm:$0xff] }
   0x6   :  { %716 = vmatprep.subr.bf16.mxu0 %v715_v6  ;;  %v54_v14 = vsel %vm53_vm1, %v45_v9, 0.0  ;;  %61 = vadd.xlane.f32.xlu1 %v60_v15  ;;  %v57_v18 = vsel %vm53_vm1, %v46_v11, 0.0  ;;  %v66_v25 = vsel %vm53_vm1, %v49_v19, 0.0  ;;  %v69_v27 = vsel %vm53_vm1, %v50_v21, 0.0  ;;  %v38_v33 = vld [vmem:[%s1002_s1 + $0x38] sm:$0xff] }
   0x7   :  { %55 = vadd.xlane.f32.xlu0 %v54_v14  ;;  %v72_v31 = vsel %vm53_vm1, %v51_v26, 0.0  ;;  %v75_v32 = vsel %vm53_vm1, %v52_v28, 0.0 }
   0x9   :  { %718 = vmatpush3.bf16.msra.mxu0 %v715_v6 }
   0xa   :  { %64 = vadd.xlane.f32.xlu1 %v63_v20  ;;  %705 = vmatprep.subr.bf16.mxu0 %v777_v34  ;;  %v637_v20 = vld [vmem:[%s1004_s3] ss:$0 sm:$0xff] }
   0xb   :  { %58 = vadd.xlane.f32.xlu0 %v57_v18 }
   0xc   :  { %676 = vmatmul.mubr.msk.f32.vlgmr.msra.gmra.mrb[0].mxu0 %vm94_vm0, %v32_v16 }
   0xd   :  { %678 = vmatprep.mubr.msk.f32.mxu0 %vm94_vm0, %v33_v17 }
   0xe   :  { %70 = vadd.xlane.f32.xlu1 %v69_v27 }
   0xf   :  { %67 = vadd.xlane.f32.xlu0 %v66_v25 }
  0x10   :  { %679 = vmatmul.mubr.msk.f32.gmra.mrb[2].mxu0 %vm94_vm0, %v34_v23 }
  0x11   :  { %681 = vmatprep.mubr.msk.f32.mxu0 %vm94_vm0, %v35_v24 }
  0x12   :  { %76 = vadd.xlane.f32.xlu1 %v75_v32 }
  0x13   :  { %73 = vadd.xlane.f32.xlu0 %v72_v31 }
  0x14   :  { %682 = vmatmul.mubr.msk.f32.gmra.mrb[4].mxu0 %vm94_vm0, %v36_v29 }
  0x15   :  { %684 = vmatprep.mubr.msk.f32.mxu0 %vm94_vm0, %v37_v30 }
  0x18   :  { %685 = vmatmul.mubr.msk.f32.gmra.mrb[6].mxu0 %vm94_vm0, %v38_v33 }
  0x19   :  { %707 = vmatprep.mubr.msk.bf16.mxu0 %vm778_vm2, %v777_v34 }
  0x93   :  { %v62_v36 = vpop.xlane.xlu1 %61 }
  0x94   :  { %v56_v35 = vpop.xlane.xlu0 %55  ;;  %v80_v44 = vadd.f32 1.0, %v62_v36 }
  0x95   :  { %v78_v40 = vadd.f32 1.0, %v56_v35 }
  0x97   :  { %v65_v38 = vpop.xlane.xlu1 %64 }
  0x98   :  { %v59_v37 = vpop.xlane.xlu0 %58  ;;  %v81_v42 = vadd.f32 1.0, %v65_v38 }
  0x99   :  { %v79_v39 = vadd.f32 1.0, %v59_v37 }
  0x9b   :  { %v71_v41 = vpop.xlane.xlu1 %70  ;;  %729 = vrsqrt.f32 %v79_v39 }
  0x9c   :  { %v68_v43 = vpop.xlane.xlu0 %67  ;;  %731 = vrsqrt.f32 %v78_v40  ;;  %v83_v46 = vadd.f32 1.0, %v71_v41 }
  0x9d   :  { %733 = vrsqrt.f32 %v81_v42  ;;  %v82_v45 = vadd.f32 1.0, %v68_v43 }
  0x9e   :  { %735 = vrsqrt.f32 %v80_v44 }
  0x9f   :  { %v77_v47 = vpop.xlane.xlu1 %76  ;;  %737 = vrsqrt.f32 %v82_v45 }
  0xa0   :  { %v74_v48 = vpop.xlane.xlu0 %73  ;;  %v85_v49 = vadd.f32 1.0, %v77_v47  ;;  %739 = vrsqrt.f32 %v83_v46 }
  0xa1   :  { %v84_v50 = vadd.f32 1.0, %v74_v48 }
  0xa2   :  { %741 = vrsqrt.f32 %v85_v49 }
  0xa3   :  { %743 = vrsqrt.f32 %v84_v50 }
  0xa5   :  { %v730_v51 = vpop.eup %729 }
  0xa6   :  { %v732_v53 = vpop.eup %731 }
  0xa7   :  { %v900_v56 = vpop.eup %733 }
  0xa8   :  { %v736_v58 = vpop.eup %735 }
  0xa9   :  { %v903_v63 = vpop.eup %737 }
  0xaa   :  { %v905_v1 = vpop.eup %739 }
  0xac   :  { %v910_v5 = vpop.eup %741 }
  0xad   :  { %v744_v10 = vpop.eup %743 }
  0xdf   :  { %v677_v52 = vpop.f32.mrb[0].mxu0 }
  0xe0   :  { %v225_v54 = vmul.f32 %v730_v51, %v677_v52  ;;  %v185_v55 = vpop.f32.mrb[1].mxu0 }
  0xe1   :  { %v224_v57 = vmul.f32 %v732_v53, %v185_v55 }
  0xe3   :  { %v680_v59 = vpop.f32.mrb[2].mxu0  ;;  %v232_v60 = vpack.c.bf16 %v225_v54, %v224_v57 }
  0xe4   :  { %v227_v61 = vmul.f32 %v900_v56, %v680_v59  ;;  %v195_v62 = vpop.f32.mrb[3].mxu0 }
  0xe5   :  { %v226_v0 = vmul.f32 %v736_v58, %v195_v62  ;;  %688 = vmatpush3.bf16.msra.mxu1 %v232_v60 }
  0xe6   :  { %693 = vmatprep.subr.bf16.mxu1 %v777_v34 }
  0xe7   :  { %v233_v2 = vpack.c.bf16 %v227_v61, %v226_v0  ;;  %v683_v3 = vpop.f32.mrb[4].mxu0 }
  0xe8   :  { %v205_v4 = vpop.f32.mrb[5].mxu0  ;;  %690 = vmatmul.mubr.msk.bf16.vlgmr.msra.gmra.mrb[0].mxu1 %vm53_vm1, %v833_v7  ;;  %v913_v6 = vmul.f32 %v905_v1, %v683_v3 }
  0xe9   :  { %v916_v9 = vmul.f32 %v903_v63, %v205_v4  ;;  %694 = vmatpush3.bf16.msra.mxu1 %v233_v2  ;;  %695 = vmatprep.mubr.msk.bf16.mxu1 %vm778_vm2, %v777_v34 }
  0xea   :  { %699 = vmatprep.subr.bf16.mxu1 %v777_v34 }
  0xeb   :  { %v686_v11 = vpop.f32.mrb[6].mxu0  ;;  %v234_v7 = vpack.c.bf16 %v913_v6, %v916_v9 }
  0xec   :  { %v231_v12 = vmul.f32 %v910_v5, %v686_v11  ;;  %v215_v14 = vpop.f32.mrb[7].mxu0 }
  0xed   :  { %v230_v15 = vmul.f32 %v744_v10, %v215_v14 }
  0xef   :  { %v235_v16 = vpack.c.bf16 %v231_v12, %v230_v15 }
  0xf0   :  { %696 = vmatmul.mubr.msk.bf16.vlgmr.msra.gmra.mrb[4].mxu1 %vm53_vm1, %v838_v8 }
  0xf1   :  { %700 = vmatpush3.bf16.msra.mxu1 %v234_v7  ;;  %706 = vmatpush3.bf16.msra.mxu0 %v235_v16 }
  0xf2   :  { %701 = vmatprep.mubr.msk.bf16.mxu1 %vm778_vm2, %v777_v34 }
  0xf4   :  { %708 = vmatmul.mubr.msk.bf16.vlgmr.msra.gmra.mrb[8].mxu0 %vm53_vm1, %v864_v22  ;;  %v938_v22 = vld [vmem:[%s1005_s4] ss:$0 sm:$0xff] }
  0xf8   :  { %702 = vmatmul.mubr.msk.bf16.vlgmr.msra.gmra.mrb[8].mxu1 %vm53_vm1, %v847_v13 }
 0x1bb   :  { %v278_v17 = vpop.f32.mrb[0].mxu1 }
 0x1bc   :  { %v279_v18 = vadd.f32 %v278_v17, %v224_v57  ;;  %v691_v19 = vpop.f32.mrb[1].mxu1 }
 0x1bd   :  { %v281_v21 = vpop.f32.mrb[2].mxu1 }
 0x1be   :  { %v432_v8 = vmul.f32 %v732_v53, %v279_v18  ;;  %v282_v23 = vadd.f32 %v281_v21, %v225_v54  ;;  %v692_v24 = vpop.f32.mrb[3].mxu1 }
 0x1c0   :  { %v446_v25 = vadd.f32 %v637_v20, %v432_v8  ;;  %v433_v26 = vmul.f32 %v730_v51, %v282_v23 }
 0x1c2   :  { %v447_v27 = vadd.f32 %v637_v20, %v433_v26  ;;  %v454_v13 = vmax.f32 %v446_v25, 0.0 }
 0x1c3   :  { %v327_v28 = vpop.f32.mrb[4].mxu1 }
 0x1c4   :  { %v328_v29 = vadd.f32 %v327_v28, %v226_v0  ;;  %v697_v30 = vpop.f32.mrb[5].mxu1  ;;  %v468_v31 = vmul.f32 %v938_v22, %v454_v13  ;;  %548 = vst.msk [vmem:[%s1006_s5] sm:$0xff] %vm94_vm0, %v454_v13  ;;  %v455_v32 = vmax.f32 %v447_v27, 0.0 }
 0x1c5   :  { %v330_v33 = vpop.f32.mrb[6].mxu1 }
 0x1c6   :  { %v434_v34 = vmul.f32 %v736_v58, %v328_v29  ;;  %v331_v35 = vadd.f32 %v330_v33, %v227_v61  ;;  %v476_v36 = vsel %vm94_vm0, %v468_v31, 0.0  ;;  %v698_v37 = vpop.f32.mrb[7].mxu1  ;;  %v469_v38 = vmul.f32 %v938_v22, %v455_v32  ;;  %549 = vst.msk [vmem:[%s1006_s5 + $0x8] sm:$0xff] %vm94_vm0, %v455_v32 }
 0x1c7   :  { %477 = vadd.xlane.f32.xlu0 %v476_v36  ;;  %v425_v39 = vpop.f32.mrb[8].mxu0 }
 0x1c8   :  { %v448_v40 = vadd.f32 %v637_v20, %v434_v34  ;;  %v435_v41 = vmul.f32 %v900_v56, %v331_v35  ;;  %v426_v42 = vadd.f32 %v425_v39, %v230_v15  ;;  %v709_v43 = vpop.f32.mrb[9].mxu0  ;;  %v479_v44 = vsel %vm94_vm0, %v469_v38, 0.0 }
 0x1c9   :  { %480 = vadd.xlane.f32.xlu1 %v479_v44  ;;  %v428_v45 = vpop.f32.mrb[10].mxu0 }
 0x1ca   :  { %v449_v46 = vadd.f32 %v637_v20, %v435_v41  ;;  %v438_v47 = vmul.f32 %v744_v10, %v426_v42  ;;  %v429_v48 = vadd.f32 %v428_v45, %v231_v12  ;;  %v456_v49 = vmax.f32 %v448_v40, 0.0  ;;  %v710_v50 = vpop.f32.mrb[11].mxu0 }
 0x1cb   :  { %v376_v51 = vpop.f32.mrb[8].mxu1  ;;  %v564_v42 = vlaneseq }
 0x1cc   :  { %v452_v52 = vadd.f32 %v637_v20, %v438_v47  ;;  %v439_v53 = vmul.f32 %v910_v5, %v429_v48  ;;  %v377_v54 = vadd.f32 %v376_v51, %v916_v9  ;;  %v703_v55 = vpop.f32.mrb[9].mxu1  ;;  %v470_v56 = vmul.f32 %v938_v22, %v456_v49  ;;  %550 = vst.msk [vmem:[%s1006_s5 + $0x10] sm:$0xff] %vm94_vm0, %v456_v49 }
 0x1cd   :  { %v379_v57 = vpop.f32.mrb[10].mxu1  ;;  %v457_v58 = vmax.f32 %v449_v46, 0.0  ;;  %v565_v47 = vand.u32 127, %v564_v42 }
 0x1ce   :  { %v453_v59 = vadd.f32 %v637_v20, %v439_v53  ;;  %v436_v60 = vmul.f32 %v903_v63, %v377_v54  ;;  %v380_v61 = vadd.f32 %v379_v57, %v913_v6  ;;  %v482_v62 = vsel %vm94_vm0, %v470_v56, 0.0  ;;  %v704_v0 = vpop.f32.mrb[11].mxu1 }
 0x1cf   :  { %483 = vadd.xlane.f32.xlu0 %v482_v62  ;;  %v471_v2 = vmul.f32 %v938_v22, %v457_v58  ;;  %551 = vst.msk [vmem:[%s1006_s5 + $0x18] sm:$0xff] %vm94_vm0, %v457_v58  ;;  %v460_v3 = vmax.f32 %v452_v52, 0.0  ;;  %v570_v51 = vadd.s32 4294967288, %v565_v47  ;;  %v567_v53 = vshrl.u32 %v564_v42, 7 }
 0x1d0   :  { %v450_v4 = vadd.f32 %v637_v20, %v436_v60  ;;  %v437_v5 = vmul.f32 %v905_v1, %v380_v61  ;;  %v461_v9 = vmax.f32 %v453_v59, 0.0 }
 0x1d1   :  { %v485_v63 = vsel %vm94_vm0, %v471_v2, 0.0  ;;  %554 = vst.msk [vmem:[%s1006_s5 + $0x30] sm:$0xff] %vm94_vm0, %v460_v3  ;;  %v474_v7 = vmul.f32 %v938_v22, %v460_v3  ;;  %v573_v56 = vsub.s32 %v570_v51, %v567_v53  ;;  %v568_v59 = vsub.s32 %v565_v47, %v567_v53 }
 0x1d2   :  { %v451_v6 = vadd.f32 %v637_v20, %v437_v5  ;;  %486 = vadd.xlane.f32.xlu1 %v485_v63  ;;  %v458_v10 = vmax.f32 %v450_v4, 0.0  ;;  %555 = vst.msk [vmem:[%s1006_s5 + $0x38] sm:$0xff] %vm94_vm0, %v461_v9  ;;  %v475_v16 = vmul.f32 %v938_v22, %v461_v9 }
 0x1d3   :  { %v494_v17 = vsel %vm94_vm0, %v474_v7, 0.0 }
 0x1d4   :  { %v472_v11 = vmul.f32 %v938_v22, %v458_v10  ;;  %552 = vst.msk [vmem:[%s1006_s5 + $0x20] sm:$0xff] %vm94_vm0, %v458_v10  ;;  %v459_v1 = vmax.f32 %v451_v6, 0.0  ;;  %v497_v18 = vsel %vm94_vm0, %v475_v16, 0.0 }
 0x1d6   :  { %v488_v12 = vsel %vm94_vm0, %v472_v11, 0.0  ;;  %v473_v14 = vmul.f32 %v938_v22, %v459_v1  ;;  %553 = vst.msk [vmem:[%s1006_s5 + $0x28] sm:$0xff] %vm94_vm0, %v459_v1 }
 0x1d7   :  { %489 = vadd.xlane.f32.xlu0 %v488_v12 }
 0x1d8   :  { %v491_v15 = vsel %vm94_vm0, %v473_v14, 0.0 }
 0x1d9   :  { %492 = vadd.xlane.f32.xlu1 %v491_v15 }
 0x1db   :  { %495 = vadd.xlane.f32.xlu0 %v494_v17 }
 0x1dd   :  { %498 = vadd.xlane.f32.xlu1 %v497_v18 }
 0x254   :  { %v478_v19 = vpop.xlane.xlu0 %477 }
 0x255   :  { %v639_v21 = vmul.f32 -1.442695, %v478_v19 }
 0x256   :  { %v481_v20 = vpop.xlane.xlu1 %480 }
 0x257   :  { %v640_v23 = vmul.f32 -1.442695, %v481_v20  ;;  %745 = vpow2.f32 %v639_v21 }
 0x259   :  { %747 = vpow2.f32 %v640_v23 }
 0x25c   :  { %v484_v8 = vpop.xlane.xlu0 %483 }
 0x25d   :  { %v641_v24 = vmul.f32 -1.442695, %v484_v8 }
 0x25f   :  { %v487_v25 = vpop.xlane.xlu1 %486 }
 0x260   :  { %v642_v26 = vmul.f32 -1.442695, %v487_v25 }
 0x261   :  { %v746_v31 = vpop.eup %745 }
 0x262   :  { %749 = vpow2.f32 %v642_v26  ;;  %v524_v37 = vadd.f32 1.0, %v746_v31 }
 0x263   :  { %751 = vpow2.f32 %v641_v24  ;;  %v748_v33 = vpop.eup %747 }
 0x264   :  { %v490_v22 = vpop.xlane.xlu0 %489  ;;  %v525_v39 = vadd.f32 1.0, %v748_v33 }
 0x265   :  { %v643_v27 = vmul.f32 -1.442695, %v490_v22 }
 0x266   :  { %v493_v13 = vpop.xlane.xlu1 %492 }
 0x267   :  { %753 = vpow2.f32 %v643_v27  ;;  %v644_v28 = vmul.f32 -1.442695, %v493_v13 }
 0x268   :  { %v496_v29 = vpop.xlane.xlu0 %495 }
 0x269   :  { %755 = vpow2.f32 %v644_v28  ;;  %v645_v30 = vmul.f32 -1.442695, %v496_v29 }
 0x26a   :  { %v499_v32 = vpop.xlane.xlu1 %498 }
 0x26b   :  { %757 = vpow2.f32 %v645_v30  ;;  %v646_v34 = vmul.f32 -1.442695, %v499_v32 }
 0x26c   :  { %v750_v35 = vpop.eup %749 }
 0x26d   :  { %v752_v36 = vpop.eup %751  ;;  %759 = vpow2.f32 %v646_v34  ;;  %v527_v38 = vadd.f32 1.0, %v750_v35 }
 0x26e   :  { %v526_v40 = vadd.f32 1.0, %v752_v36  ;;  %761 = vrcp.f32 %v524_v37 }
 0x26f   :  { %763 = vrcp.f32 %v527_v38 }
 0x270   :  { %765 = vrcp.f32 %v525_v39 }
 0x271   :  { %v754_v41 = vpop.eup %753  ;;  %767 = vrcp.f32 %v526_v40 }
 0x272   :  { %v528_v43 = vadd.f32 1.0, %v754_v41 }
 0x273   :  { %v756_v44 = vpop.eup %755 }
 0x274   :  { %v529_v45 = vadd.f32 1.0, %v756_v44  ;;  %769 = vrcp.f32 %v528_v43 }
 0x275   :  { %v758_v46 = vpop.eup %757 }
 0x276   :  { %771 = vrcp.f32 %v529_v45  ;;  %v530_v48 = vadd.f32 1.0, %v758_v46 }
 0x277   :  { %v760_v49 = vpop.eup %759 }
 0x278   :  { %773 = vrcp.f32 %v530_v48  ;;  %v531_v50 = vadd.f32 1.0, %v760_v49  ;;  %v762_v52 = vpop.eup %761 }
 0x279   :  { %v764_v54 = vpop.eup %763  ;;  %v569_v5 = vrot.slane %v762_v52, %v568_v59 }
 0x27a   :  { %775 = vrcp.f32 %v531_v50  ;;  %v766_v55 = vpop.eup %765  ;;  %v584_v60 = vrot.slane %v764_v54, %v573_v56 }
 0x27b   :  { %v768_v57 = vpop.eup %767  ;;  %v574_v62 = vrot.slane %v766_v55, %v573_v56 }
 0x27c   :  { %v580_v0 = vrot.slane %v768_v57, %v568_v59 }
 0x27d   :  { %v576_v10 = vsel %vm575_vm3, %v574_v62, %v569_v5 }
 0x27e   :  { %v770_v58 = vpop.eup %769  ;;  %v585_v9 = vsel %vm575_vm3, %v584_v60, %v580_v0 }
 0x27f   :  { %v589_v4 = vrot.slane %v770_v58, %v568_v59  ;;  %v605_v12 = vsel %vm604_vm4, %v585_v9, %v576_v10 }
 0x280   :  { %v772_v61 = vpop.eup %771 }
 0x281   :  { %v593_v2 = vrot.slane %v772_v61, %v573_v56 }
 0x282   :  { %v774_v3 = vpop.eup %773 }
 0x283   :  { %v594_v6 = vsel %vm575_vm3, %v593_v2, %v589_v4  ;;  %v598_v11 = vrot.slane %v774_v3, %v568_v59 }
 0x284   :  { %v776_v63 = vpop.eup %775  ;;  %v607_v14 = vsel %vm606_vm5, %v594_v6, %v605_v12 }
 0x285   :  { %v602_v1 = vrot.slane %v776_v63, %v573_v56 }
 0x287   :  { %v603_v7 = vsel %vm575_vm3, %v602_v1, %v598_v11 }
 0x288   :  { %v609_v15 = vsel %vm608_vm6, %v603_v7, %v607_v14 }
 0x289   :  { %612 = vst.msk [vmem:[%s1007_s6] sm:$0xf] %vm611_vm7, %v609_v15 }

// kernel: _lambda_.5
= control target key start
LH: loop header
LB: loop body
LE: loop exit
PB: predicated region body
PF: predicated region fallthrough
CT: control target
= control target key end

     0   :  { %vm29_vm0 = vcmask 64512   ;;  %v749_v2 = vmov 0.0   ;;  %vm750_vm1 = vmmov 0   ;;  %s898_s0 = inlined_call_operand.vmem [shape: f32[4,8,32], index: 0, kind: input, shape index: {}]   ;;  %s899_s1 = inlined_call_operand.vmem [shape: f32[4,4,8], index: 1, kind: input, shape index: {}]   ;;  %s900_s2 = inlined_call_operand.vmem [shape: f32[2,32], index: 2, kind: input, shape index: {}]   ;;  %s901_s3 = inlined_call_operand.vmem [shape: f32[96,2], index: 3, kind: input, shape index: {}]   ;;  %s902_s4 = inlined_call_operand.vmem [shape: f32[1,2], index: 4, kind: input, shape index: {}]   ;;  %s903_s5 = inlined_call_operand.hbm [shape: f32[2,2], index: 5, kind: output, shape index: {}]  }
   0x1   :  { %v25_v0 = vld [vmem:[%s898_s0] sm:$0xff]  ;;  %650 = vmatprep.subr.mxu1 %v749_v2  ;;  %652 = vmatprep.mubr.msk.f32.mxu1 %vm750_vm1, %v749_v2  ;;  %v26_v3 = vld [vmem:[%s898_s0 + $0x8] sm:$0xff]  ;;  %v27_v4 = vld [vmem:[%s898_s0 + $0x10] sm:$0xff] }
   0x2   :  { %v21_v1 = vld [vmem:[%s899_s1] sm:$0xf]  ;;  %651 = vmatpush3.msra.mxu1 %v25_v0  ;;  %660 = vmatprep.subr.mxu0 %v749_v2  ;;  %v23_v5 = vld [vmem:[%s899_s1 + $0x8] sm:$0xf] }
   0x3   :  { %653 = vmatmul.mubr.msk.f32.vlgmr.msra.gmra.mrb[0].mxu1 %vm29_vm0, %v21_v1  ;;  %655 = vmatprep.subr.mxu1 %v749_v2 }
   0x4   :  { %10 = vsyncpa [#allocation3], 0  ;;  %656 = vmatpush3.msra.mxu1 %v26_v3  ;;  %661 = vmatpush3.msra.mxu0 %v27_v4  ;;  %v22_v6 = vld [vmem:[%s899_s1 + $0x4] sm:$0xf]  ;;  %v28_v7 = vld [vmem:[%s898_s0 + $0x18] sm:$0xff]  ;;  %v751_v12 = vmov 0.0|0.0  }
   0x5   :  { %662 = vmatprep.mubr.msk.f32.mxu0 %vm750_vm1, %v749_v2  ;;  %657 = vmatprep.mubr.msk.f32.mxu1 %vm750_vm1, %v749_v2  ;;  %v24_v8 = vld [vmem:[%s899_s1 + $0xc] sm:$0xf]  ;;  %v356_v9 = vld [vmem:[%s901_s3] sm:$0xff]  ;;  %v358_v16 = vld [vmem:[%s901_s3 + $0x10] sm:$0xff]  ;;  %vm322_vm2 = vcmask 257024   ;;  %vm366_vm3 = vcmask 1041409  }
   0x6   :  { %663 = vmatmul.mubr.msk.f32.vlgmr.msra.gmra.mrb[0].mxu0 %vm29_vm0, %v23_v5  ;;  %665 = vmatprep.subr.mxu1 %v749_v2  ;;  %v357_v10 = vld [vmem:[%s901_s3 + $0x8] sm:$0xff]  ;;  %v360_v13 = vld [vmem:[%s901_s3 + $0x20] sm:$0xff]  ;;  %v359_v17 = vld [vmem:[%s901_s3 + $0x18] sm:$0xff]  ;;  %vm368_vm4 = vcmask 261120   ;;  %s752_s0 = smov [#allocation2]   ;;  %vm603_vm5 = vcmask 9216  }
   0x7   :  { %658 = vmatmul.mubr.msk.f32.vlgmr.msra.gmra.mrb[2].mxu1 %vm29_vm0, %v22_v6  ;;  %678 = vmatprep.mubr.msk.f32.mxu0 %vm750_vm1, %v749_v2  ;;  %v710_v11 = vpack.c.bf16 %v357_v10, %v356_v9  ;;  %v361_v14 = vld [vmem:[%s901_s3 + $0x28] sm:$0xff]  ;;  %v713_v18 = vpack.c.bf16 %v359_v17, %v358_v16  ;;  %v362_v19 = vld [vmem:[%s901_s3 + $0x30] sm:$0xff]  ;;  %v363_v20 = vld [vmem:[%s901_s3 + $0x38] sm:$0xff]  ;;  %s611_s9 = sshll.u32 %s752_s0, 4  ;;  %s612_s9 = int_to_ptr.vmem [resolvable:$true] %s611_s9 }
   0x8   :  { %666 = vmatpush3.msra.mxu1 %v28_v7  ;;  %667 = vmatprep.mubr.msk.f32.mxu1 %vm750_vm1, %v749_v2  ;;  %v704_v15 = vpack.c.bf16 %v361_v14, %v360_v13  ;;  %v707_v21 = vpack.c.bf16 %v363_v20, %v362_v19  ;;  %v517_v59 = vld [vmem:[%s901_s3 + $0x40] sm:$0xff]  ;;  %v518_v60 = vld [vmem:[%s901_s3 + $0x48] sm:$0xff]  ;;  %v519_v3 = vld [vmem:[%s901_s3 + $0x50] sm:$0xff]  ;;  %p730_p1 = scmp.lt.s32.totalorder %s612_s9, %s612_s9 }
   0x9   :  { %709 = vmatprep.subr.bf16.mxu1 %v751_v12  ;;  %703 = vmatprep.subr.bf16.mxu0 %v751_v12  ;;  %v716_v1 = vpack.c.bf16 %v518_v60, %v517_v59  ;;  %v520_v4 = vld [vmem:[%s901_s3 + $0x58] sm:$0xff]  ;;  %v516_v7 = vld [vmem:[%s900_s2] sm:$0x3]  ;;  %s725_s2 = scalar_lea.vmem %s612_s9, 32 }
   0xa   :  { %705 = vmatpush3.bf16.msra.mxu0 %v704_v15  ;;  %v719_v6 = vpack.c.bf16 %v520_v4, %v519_v3  ;;  %v626_v15 = vld [vmem:[%s902_s4] ss:$0 sm:$0xff]  ;;  %p726_p0 = scmp.ne.s32.totalorder %s612_s9, %s725_s2  ;;  %p731_p2 = scmp.lt.s32.totalorder %s725_s2, %s725_s2 }
   0xb   :  { %668 = vmatmul.mubr.msk.f32.vlgmr.msra.gmra.mrb[4].mxu1 %vm29_vm0, %v24_v8  ;;  %706 = vmatprep.subr.bf16.mxu0 %v751_v12 }
   0xc   :  { %689 = vmatprep.mubr.msk.f32.mxu1 %vm750_vm1, %v749_v2  ;;  %711 = vmatpush3.bf16.msra.mxu1 %v710_v11  ;;  %p732_p3 = por %p731_p2, %p730_p1 }
   0xd   :  { %712 = vmatprep.subr.bf16.mxu1 %v751_v12 }
   0xe   :  { %708 = vmatpush3.bf16.msra.mxu0 %v707_v21  ;;  %p733_p4 = pnand %p732_p3, %p726_p0 }
   0xf   :  { %715 = vmatprep.subr.bf16.mxu0 %v751_v12 }
  0x10   :  { %714 = vmatpush3.bf16.msra.mxu1 %v713_v18 }
  0xd6   :  { %v99_v22 = vpop.f32.mrb[0].mxu1 }
  0xd7   :  { %v323_v23 = vsel %vm322_vm2, %v99_v22, 0.0  ;;  %v654_v24 = vpop.f32.mrb[1].mxu1 }
  0xd8   :  { %v324_v25 = vrot.slane %v323_v23, 4 }
  0xd9   :  { %v245_v26 = vpop.f32.mrb[0].mxu0 }
  0xda   :  { %v325_v27 = vadd.f32 %v324_v25, %v323_v23  ;;  %v337_v28 = vsel %vm322_vm2, %v245_v26, 0.0  ;;  %v172_v29 = vpop.f32.mrb[2].mxu1  ;;  %v664_v30 = vpop.f32.mrb[1].mxu0 }
  0xdb   :  { %v338_v31 = vrot.slane %v337_v28, 4  ;;  %v330_v32 = vsel %vm322_vm2, %v172_v29, 0.0  ;;  %v659_v33 = vpop.f32.mrb[3].mxu1 }
  0xdc   :  { %v326_v34 = vrot.slane %v325_v27, 2  ;;  %v331_v35 = vrot.slane %v330_v32, 4 }
  0xdd   :  { %v339_v36 = vadd.f32 %v338_v31, %v337_v28 }
  0xde   :  { %v327_v37 = vadd.f32 %v326_v34, %v325_v27  ;;  %v332_v38 = vadd.f32 %v331_v35, %v330_v32  ;;  %v318_v39 = vpop.f32.mrb[4].mxu1 }
  0xdf   :  { %v340_v40 = vrot.slane %v339_v36, 2  ;;  %v344_v41 = vsel %vm322_vm2, %v318_v39, 0.0  ;;  %v669_v42 = vpop.f32.mrb[5].mxu1 }
  0xe0   :  { %v328_v43 = vrot.slane %v327_v37, 1  ;;  %v333_v44 = vrot.slane %v332_v38, 2  ;;  %v345_v45 = vrot.slane %v344_v41, 4 }
  0xe1   :  { %v341_v46 = vadd.f32 %v340_v40, %v339_v36 }
  0xe2   :  { %v334_v47 = vadd.f32 %v333_v44, %v332_v38  ;;  %v346_v48 = vadd.f32 %v345_v45, %v344_v41  ;;  %v329_v49 = vadd.f32 %v328_v43, %v327_v37 }
  0xe3   :  { %v342_v50 = vrot.slane %v341_v46, 1 }
  0xe4   :  { %v335_v51 = vrot.slane %v334_v47, 1  ;;  %v347_v52 = vrot.slane %v346_v48, 2  ;;  %v352_v55 = vmul.f32 0.25, %v329_v49 }
  0xe5   :  { %v343_v56 = vadd.f32 %v342_v50, %v341_v46 }
  0xe6   :  { %v336_v53 = vadd.f32 %v335_v51, %v334_v47  ;;  %v348_v54 = vadd.f32 %v347_v52, %v346_v48 }
  0xe7   :  { %v354_v63 = vmul.f32 0.25, %v343_v56 }
  0xe8   :  { %v353_v57 = vmul.f32 0.25, %v336_v53  ;;  %v349_v58 = vrot.slane %v348_v54, 1 }
  0xea   :  { %v350_v61 = vadd.f32 %v349_v58, %v348_v54  ;;  %v443_v62 = vsel %vm366_vm3, %v353_v57, %v352_v55 }
  0xeb   :  { %690 = vmatmul.mubr.msk.f32.vlgmr.msra.gmra.mrb[6].mxu1 %vm368_vm4, %v443_v62 }
  0xec   :  { %v355_v0 = vmul.f32 0.25, %v350_v61 }
  0xee   :  { %v367_v5 = vsel %vm366_vm3, %v355_v0, %v354_v63 }
  0xef   :  { %679 = vmatmul.mubr.msk.f32.vlgmr.msra.gmra.mrb[2].mxu0 %vm368_vm4, %v367_v5 }
  0xf0   :  { %717 = vmatpush3.bf16.msra.mxu0 %v716_v1  ;;  %700 = vmatprep.mubr.msk.f32.mxu0 %vm750_vm1, %v749_v2 }
  0xf1   :  { %718 = vmatprep.subr.bf16.mxu0 %v751_v12 }
  0xf4   :  { %720 = vmatpush3.bf16.msra.mxu0 %v719_v6 }
  0xf7   :  { %701 = vmatmul.mubr.msk.f32.vlgmr.msra.gmra.mrb[4].mxu0 %vm368_vm4, %v516_v7 }
 0x1be   :  { %v512_v8 = vpop.f32.mrb[6].mxu1 }
 0x1bf   :  { %v691_v9 = vpop.f32.mrb[7].mxu1 }
 0x1c2   :  { %v437_v10 = vpop.f32.mrb[2].mxu0 }
 0x1c3   :  { %v513_v11 = vadd.f32 %v512_v8, %v437_v10  ;;  %v680_v13 = vpop.f32.mrb[3].mxu0 }
 0x1ca   :  { %v590_v14 = vpop.f32.mrb[4].mxu0 }
 0x1cb   :  { %v594_v2 = vadd.f32 %v590_v14, %v513_v11  ;;  %v702_v12 = vpop.f32.mrb[5].mxu0 }
 0x1cd   :  { %v602_v16 = vadd.f32 %v626_v15, %v594_v2 }
 0x1cf   :  { %604 = vst.msk [vmem:[#allocation2] sm:$0x3] %vm603_vm5, %v602_v16 }
 0x1d0   :  { %736 = shalt.err (!%p733_p4)
}
 0x1d1   :  { %s737_s1 = scalar_lea.hbm %s903_s5, 32 }
 0x1d2   :  { %p738_p5 = scmp.ne.s32.totalorder %s903_s5, %s737_s1  ;;  %p741_p6 = scmp.lt.u32.totalorder %s737_s1, %s903_s5 }
 0x1d4   :  { %p743_p7 = pnand %p741_p6, %p738_p5 }
 0x1d6   :  { %746 = shalt.err (!%p743_p7)
}
 0x1d7   :  { %614 = dma.vmem_to_hbm [thread:$0]  %s612_s9, 32, %s903_s5, [#allocation3]  }
 0x1d8   :  { %747 = dma.done.wait [#allocation3], 32  }
 0x1d9   :  { %748 = vsyncadd [#allocation3], 4294967264 }
 0x1da   :  { %618 = vsyncpa [#allocation3], 1 }

// kernel: _lambda_.4
= control target key start
LH: loop header
LB: loop body
LE: loop exit
PB: predicated region body
PF: predicated region fallthrough
CT: control target
= control target key end

     0   :  { %v1386_v0 = vmov 0.0|0.0   ;;  %vm1387_vm0 = vmmov 0   ;;  %v1388_v6 = vmov 0.0   ;;  %vm53_vm1 = vcmask 130048   ;;  %s1611_s3 = inlined_call_operand.vmem [shape: f32[4,16,32], index: 3, kind: input, shape index: {}]   ;;  %s1612_s0 = inlined_call_operand.vmem [shape: f32[4,8,16], index: 0, kind: input, shape index: {}]   ;;  %s1613_s2 = inlined_call_operand.vmem [shape: bf16[4,16,16], index: 2, kind: input, shape index: {}]   ;;  %s1614_s1 = inlined_call_operand.vmem [shape: bf16[4,8,16], index: 1, kind: input, shape index: {}]   ;;  %s1615_s4 = inlined_call_operand.vmem [shape: f32[32,32], index: 4, kind: input, shape index: {}]   ;;  %s1616_s5 = inlined_call_operand.vmem [shape: f32[1,32], index: 5, kind: input, shape index: {}]   ;;  %s1617_s6 = inlined_call_operand.vmem [shape: f32[1,32], index: 6, kind: input, shape index: {}]   ;;  %s1618_s7 = inlined_call_operand.vmem [shape: f32[4,8,32], index: 7, kind: output, shape index: {0}]   ;;  %s1619_s8 = inlined_call_operand.vmem [shape: f32[1,4,8], index: 8, kind: output, shape index: {1}]  }
   0x1   :  { %1335 = vmatprep.subr.bf16.mxu1 %v1386_v0  ;;  %1341 = vmatprep.subr.bf16.mxu0 %v1386_v0  ;;  %v45_v1 = vld [vmem:[%s1611_s3] sm:$0xff]  ;;  %v46_v2 = vld [vmem:[%s1611_s3 + $0x8] sm:$0xff]  ;;  %v47_v8 = vld [vmem:[%s1611_s3 + $0x10] sm:$0xff]  ;;  %vm745_vm2 = vcmask 261120   ;;  %vm724_vm3 = vcmask 64512   ;;  %vm858_vm4 = vcmask 1043456  }
   0x2   :  { %v49_v3 = vld [vmem:[%s1611_s3 + $0x20] sm:$0xff]  ;;  %v1336_v4 = vpack.c.bf16 %v46_v2, %v45_v1  ;;  %v50_v5 = vld [vmem:[%s1611_s3 + $0x28] sm:$0xff]  ;;  %1225 = vmatprep.mubr.msk.f32.mxu1 %vm1387_vm0, %v1388_v6  ;;  %1239 = vmatprep.mubr.msk.f32.mxu0 %vm1387_vm0, %v1388_v6  ;;  %v48_v9 = vld [vmem:[%s1611_s3 + $0x18] sm:$0xff]  ;;  %vm1130_vm5 = vcmask 1041409   ;;  %vm1132_vm6 = vcmask 1042434   ;;  %vm1134_vm7 = vcmask 1043459  }
   0x3   :  { %v1342_v7 = vpack.c.bf16 %v50_v5, %v49_v3  ;;  %v29_v10 = vld [vmem:[%s1612_s0] sm:$0xff]  ;;  %v31_v11 = vld [vmem:[%s1612_s0 + $0x10] sm:$0xff]  ;;  %v1339_v12 = vpack.c.bf16 %v48_v9, %v47_v8  ;;  %v52_v15 = vld [vmem:[%s1611_s3 + $0x38] sm:$0xff]  ;;  %vm1137_vm8 = vcmask 60416  }
   0x4   :  { %1337 = vmatpush3.bf16.msra.mxu1 %v1336_v4  ;;  %v1358_v13 = vld [vmem:[%s1613_s2] sm:$0xff]   ;;  %v51_v14 = vld [vmem:[%s1611_s3 + $0x30] sm:$0xff]  ;;  %v30_v16 = vld [vmem:[%s1612_s0 + $0x8] sm:$0xff] }
   0x5   :  { %1343 = vmatpush3.bf16.msra.mxu0 %v1342_v7  ;;  %1338 = vmatprep.subr.bf16.mxu1 %v1386_v0  ;;  %v1345_v17 = vpack.c.bf16 %v52_v15, %v51_v14  ;;  %v33_v18 = vld [vmem:[%s1614_s1] sm:$0xf]  ;;  %v1360_v19 = vld [vmem:[%s1613_s2 + $0x10] sm:$0xff]   ;;  %v32_v20 = vld [vmem:[%s1612_s0 + $0x18] sm:$0xff] }
   0x6   :  { %1249 = vmatprep.subr.bf16.mxu0 %v1388_v6  ;;  %v1359_v21 = vld [vmem:[%s1613_s2 + $0x8] sm:$0xff]   ;;  %v34_v22 = vld [vmem:[%s1614_s1 + $0x4] sm:$0xf]  ;;  %v1361_v23 = vld [vmem:[%s1613_s2 + $0x18] sm:$0xff]   ;;  %v353_v26 = vsel %vm53_vm1, %v33_v18, 0 }
   0x7   :  { %1226 = vmatmul.mubr.msk.f32.vlgmr.msra.gmra.mrb[0].mxu1 %vm53_vm1, %v29_v10  ;;  %v35_v24 = vld [vmem:[%s1614_s1 + $0x8] sm:$0xf]  ;;  %v36_v25 = vld [vmem:[%s1614_s1 + $0xc] sm:$0xf]  ;;  %v402_v27 = vsel %vm53_vm1, %v34_v22, 0  ;;  %v718_v32 = vld [vmem:[%s1615_s4] sm:$0xff] }
   0x8   :  { %1240 = vmatmul.mubr.msk.f32.vlgmr.msra.gmra.mrb[0].mxu0 %vm53_vm1, %v31_v11  ;;  %1340 = vmatpush3.bf16.msra.mxu1 %v1339_v12  ;;  %v719_v33 = vld [vmem:[%s1615_s4 + $0x8] sm:$0xff]  ;;  %v451_v39 = vsel %vm53_vm1, %v35_v24, 0  ;;  %v720_v45 = vld [vmem:[%s1615_s4 + $0x10] sm:$0xff]  ;;  %v721_v46 = vld [vmem:[%s1615_s4 + $0x18] sm:$0xff]  ;;  %v500_v51 = vsel %vm53_vm1, %v36_v25, 0 }
   0x9   :  { %1250 = vmatpush3.bf16.msra.mxu0 %v1358_v13  ;;  %1232 = vmatprep.mubr.msk.f32.mxu1 %vm1387_vm0, %v1388_v6  ;;  %v1347_v40 = vpack.c.bf16 %v719_v33, %v718_v32  ;;  %v1351_v55 = vpack.c.bf16 %v721_v46, %v720_v45 }
   0xa   :  { %1251 = vmatprep.mubr.msk.bf16.mxu0 %vm1387_vm0, %v1388_v6  ;;  %1344 = vmatprep.subr.bf16.mxu1 %v1386_v0 }
   0xb   :  { %1233 = vmatmul.mubr.msk.f32.vlgmr.msra.gmra.mrb[2].mxu1 %vm53_vm1, %v30_v16  ;;  %1261 = vmatprep.subr.bf16.mxu0 %v1388_v6 }
   0xc   :  { %1252 = vmatmul.mubr.msk.bf16.vlgmr.msra.gmra.mrb[4].mxu0 %vm53_vm1, %v33_v18  ;;  %1346 = vmatpush3.bf16.msra.mxu1 %v1345_v17 }
   0xd   :  { %1246 = vmatprep.mubr.msk.f32.mxu1 %vm1387_vm0, %v1388_v6  ;;  %1255 = vmatprep.subr.bf16.mxu1 %v1388_v6 }
   0xe   :  { %1262 = vmatpush3.bf16.msra.mxu0 %v1360_v19  ;;  %1263 = vmatprep.mubr.msk.bf16.mxu0 %vm1387_vm0, %v1388_v6 }
   0xf   :  { %1247 = vmatmul.mubr.msk.f32.vlgmr.msra.gmra.mrb[4].mxu1 %vm53_vm1, %v32_v20  ;;  %1273 = vmatprep.subr.bf16.mxu0 %v1388_v6 }
  0x10   :  { %1256 = vmatpush3.bf16.msra.mxu1 %v1359_v21  ;;  %1257 = vmatprep.mubr.msk.bf16.mxu1 %vm1387_vm0, %v1388_v6 }
  0x11   :  { %1267 = vmatprep.subr.bf16.mxu1 %v1388_v6 }
  0x13   :  { %1258 = vmatmul.mubr.msk.bf16.vlgmr.msra.gmra.mrb[8].mxu1 %vm53_vm1, %v34_v22 }
  0x14   :  { %1264 = vmatmul.mubr.msk.bf16.vlgmr.msra.gmra.mrb[8].mxu0 %vm53_vm1, %v35_v24  ;;  %1268 = vmatpush3.bf16.msra.mxu1 %v1361_v23 }
  0x15   :  { %1269 = vmatprep.mubr.msk.bf16.mxu1 %vm1387_vm0, %v1388_v6  ;;  %1275 = vmatprep.mubr.msk.bf16.mxu0 %vm1387_vm0, %v1388_v6 }
  0x16   :  { %1279 = vmatprep.subr.bf16.mxu1 %v1388_v6 }
  0x17   :  { %1274 = vmatpush3.bf16.xpose.msra.mxu0 %v353_v26 }
  0x18   :  { %1285 = vmatprep.subr.bf16.mxu0 %v1388_v6 }
  0x1b   :  { %1270 = vmatmul.mubr.msk.bf16.vlgmr.msra.gmra.mrb[12].mxu1 %vm53_vm1, %v36_v25 }
  0x1c   :  { %1281 = vmatprep.mubr.msk.bf16.mxu1 %vm1387_vm0, %v1388_v6 }
  0x1d   :  { %1280 = vmatpush3.bf16.xpose.msra.mxu1 %v402_v27 }
  0x1e   :  { %1291 = vmatprep.subr.bf16.mxu1 %v1388_v6 }
  0xda   :  { %v123_v28 = vpop.f32.mrb[0].mxu1 }
  0xdb   :  { %v1227_v29 = vpop.f32.mrb[1].mxu1  ;;  %v269_v30 = vpop.f32.mrb[0].mxu0 }
  0xdc   :  { %v1241_v31 = vpop.f32.mrb[1].mxu0 }
  0xde   :  { %v196_v34 = vpop.f32.mrb[2].mxu1 }
  0xdf   :  { %v389_v35 = vpop.f32.mrb[4].mxu0  ;;  %v1234_v36 = vpop.f32.mrb[3].mxu1 }
  0xe0   :  { %v542_v37 = vpack.c.bf16 %v389_v35, %v389_v35  ;;  %v1253_v38 = vpop.f32.mrb[5].mxu0 }
  0xe1   :  { %v392_v41 = vpop.f32.mrb[6].mxu0 }
  0xe2   :  { %1276 = vmatmul.mubr.msk.bf16.vlgmr.msra.gmra.mrb[12].mxu0 %vm53_vm1, %v542_v37  ;;  %v342_v42 = vpop.f32.mrb[4].mxu1  ;;  %v1254_v43 = vpop.f32.mrb[7].mxu0 }
  0xe3   :  { %1286 = vmatpush3.bf16.xpose.msra.mxu0 %v451_v39  ;;  %v1248_v44 = vpop.f32.mrb[5].mxu1  ;;  %1287 = vmatprep.mubr.msk.bf16.mxu0 %vm1387_vm0, %v1388_v6 }
  0xe4   :  { %1348 = vmatprep.subr.bf16.mxu0 %v1347_v40 }
  0xe6   :  { %v438_v47 = vpop.f32.mrb[8].mxu1 }
  0xe7   :  { %v543_v48 = vpack.c.bf16 %v438_v47, %v438_v47  ;;  %v487_v49 = vpop.f32.mrb[8].mxu0  ;;  %v1259_v50 = vpop.f32.mrb[9].mxu1 }
  0xe8   :  { %v544_v52 = vpack.c.bf16 %v487_v49, %v487_v49  ;;  %v441_v53 = vpop.f32.mrb[10].mxu1  ;;  %v1265_v54 = vpop.f32.mrb[9].mxu0 }
  0xe9   :  { %v1260_v56 = vpop.f32.mrb[11].mxu1  ;;  %v490_v57 = vpop.f32.mrb[10].mxu0  ;;  %1282 = vmatmul.mubr.msk.bf16.vlgmr.msra.gmra.mrb[16].mxu1 %vm53_vm1, %v543_v48 }
  0xea   :  { %1288 = vmatmul.mubr.msk.bf16.vlgmr.msra.gmra.mrb[16].mxu0 %vm53_vm1, %v544_v52  ;;  %v1266_v58 = vpop.f32.mrb[11].mxu0  ;;  %1292 = vmatpush3.bf16.xpose.msra.mxu1 %v500_v51  ;;  %v1171_v56 = vld [vmem:[%s1616_s5] ss:$0 sm:$0xff] }
  0xeb   :  { %1350 = vmatpush3.bf16.msra.mxu0 %v1347_v40  ;;  %1305 = vmatprep.mubr.msk.f32.mxu0 %vm745_vm2, %v123_v28 }
  0xec   :  { %1352 = vmatprep.subr.bf16.mxu0 %v1351_v55  ;;  %1293 = vmatprep.mubr.msk.bf16.mxu1 %vm1387_vm0, %v1388_v6 }
  0xed   :  { %1311 = vmatprep.subr.bf16.mxu1 %v1388_v6 }
  0xee   :  { %v536_v59 = vpop.f32.mrb[12].mxu1 }
  0xef   :  { %v545_v60 = vpack.c.bf16 %v536_v59, %v536_v59  ;;  %1354 = vmatpush3.bf16.msra.mxu0 %v1351_v55  ;;  %v1271_v61 = vpop.f32.mrb[13].mxu1 }
  0xf0   :  { %v539_v62 = vpop.f32.mrb[14].mxu1  ;;  %1317 = vmatprep.subr.bf16.mxu0 %v1388_v6 }
  0xf1   :  { %v1272_v63 = vpop.f32.mrb[15].mxu1  ;;  %1294 = vmatmul.mubr.msk.bf16.vlgmr.msra.gmra.mrb[20].mxu1 %vm53_vm1, %v545_v60 }
  0xf2   :  { %1306 = vmatmul.mubr.msk.f32.vlgmr.msra.gmra.mrb[2].mxu0 %vm745_vm2, %v196_v34  ;;  %1313 = vmatprep.mubr.msk.bf16.mxu1 %vm1387_vm0, %v1388_v6 }
  0xf3   :  { %1308 = vmatprep.mubr.msk.f32.mxu0 %vm745_vm2, %v269_v30 }
  0xf6   :  { %1309 = vmatmul.mubr.msk.f32.gmra.mrb[20].mxu0 %vm745_vm2, %v342_v42 }
  0xf7   :  { %1319 = vmatprep.mubr.msk.bf16.mxu0 %vm1387_vm0, %v1388_v6 }
 0x1b5   :  { %v583_v0 = vpop.f32.mrb[12].mxu0 }
 0x1b6   :  { %v725_v1 = vsel %vm724_vm3, %v583_v0, 0.0  ;;  %v1277_v2 = vpop.f32.mrb[13].mxu0  ;;  %v847_v38 = vpack.c.bf16 %v583_v0, %v583_v0 }
 0x1b7   :  { %726 = vadd.xlane.f32.xlu0 %v725_v1  ;;  %v586_v3 = vpop.f32.mrb[14].mxu0 }
 0x1b8   :  { %v1278_v4 = vpop.f32.mrb[15].mxu0 }
 0x1bc   :  { %v626_v5 = vpop.f32.mrb[16].mxu1 }
 0x1bd   :  { %v669_v7 = vpop.f32.mrb[16].mxu0  ;;  %v1283_v8 = vpop.f32.mrb[17].mxu1  ;;  %v728_v9 = vsel %vm724_vm3, %v626_v5, 0.0  ;;  %v848_v46 = vpack.c.bf16 %v626_v5, %v626_v5 }
 0x1be   :  { %v731_v10 = vsel %vm724_vm3, %v669_v7, 0.0  ;;  %v1289_v11 = vpop.f32.mrb[17].mxu0  ;;  %729 = vadd.xlane.f32.xlu0 %v728_v9  ;;  %v629_v12 = vpop.f32.mrb[18].mxu1  ;;  %v849_v48 = vpack.c.bf16 %v669_v7, %v669_v7 }
 0x1bf   :  { %732 = vadd.xlane.f32.xlu1 %v731_v10  ;;  %v1284_v13 = vpop.f32.mrb[19].mxu1  ;;  %v672_v14 = vpop.f32.mrb[18].mxu0 }
 0x1c0   :  { %v1290_v15 = vpop.f32.mrb[19].mxu0 }
 0x1c4   :  { %v712_v16 = vpop.f32.mrb[20].mxu1 }
 0x1c5   :  { %v1307_v17 = vpop.f32.mrb[2].mxu0  ;;  %v1295_v18 = vpop.f32.mrb[21].mxu1  ;;  %v734_v19 = vsel %vm724_vm3, %v712_v16, 0.0  ;;  %v850_v52 = vpack.c.bf16 %v712_v16, %v712_v16 }
 0x1c6   :  { %v824_v20 = vpop.f32.mrb[3].mxu0  ;;  %735 = vadd.xlane.f32.xlu1 %v734_v19  ;;  %v715_v21 = vpop.f32.mrb[22].mxu1 }
 0x1c7   :  { %v1296_v22 = vpop.f32.mrb[23].mxu1 }
 0x1c9   :  { %v1310_v23 = vpop.f32.mrb[20].mxu0 }
 0x1ca   :  { %v834_v24 = vpop.f32.mrb[21].mxu0 }
 0x244   :  { %v727_v25 = vpop.xlane.xlu0 %726 }
 0x245   :  { %v737_v26 = vadd.f32 1.0, %v727_v25 }
 0x247   :  { %1362 = vrsqrt.f32 %v737_v26 }
 0x24b   :  { %v730_v27 = vpop.xlane.xlu0 %729 }
 0x24c   :  { %v733_v28 = vpop.xlane.xlu1 %732  ;;  %v738_v29 = vadd.f32 1.0, %v730_v27 }
 0x24d   :  { %v739_v30 = vadd.f32 1.0, %v733_v28 }
 0x24e   :  { %1364 = vrsqrt.f32 %v738_v29 }
 0x24f   :  { %1366 = vrsqrt.f32 %v739_v30 }
 0x251   :  { %v1363_v31 = vpop.eup %1362 }
 0x252   :  { %v843_v32 = vmul.f32 %v1363_v31, %v824_v20 }
 0x253   :  { %v736_v33 = vpop.xlane.xlu1 %735 }
 0x254   :  { %v740_v34 = vadd.f32 1.0, %v736_v33  ;;  %v851_v35 = vpack.c.bf16 %v843_v32, %v843_v32 }
 0x256   :  { %1368 = vrsqrt.f32 %v740_v34  ;;  %v860_v36 = vsel %vm858_vm4, %v851_v35, 0 }
 0x257   :  { %1312 = vmatpush3.bf16.msra.mxu1 %v860_v36 }
 0x258   :  { %v1365_v37 = vpop.eup %1364  ;;  %1323 = vmatprep.subr.bf16.mxu1 %v1388_v6 }
 0x259   :  { %v1367_v39 = vpop.eup %1366  ;;  %v844_v40 = vmul.f32 %v1365_v37, %v1307_v17 }
 0x25a   :  { %1314 = vmatmul.mubr.msk.bf16.vlgmr.msra.gmra.mrb[24].mxu1 %vm724_vm3, %v847_v38  ;;  %v845_v41 = vmul.f32 %v1367_v39, %v834_v24 }
 0x25b   :  { %v852_v42 = vpack.c.bf16 %v844_v40, %v844_v40  ;;  %1325 = vmatprep.mubr.msk.bf16.mxu1 %vm1387_vm0, %v1388_v6 }
 0x25c   :  { %v853_v43 = vpack.c.bf16 %v845_v41, %v845_v41 }
 0x25d   :  { %v906_v44 = vsel %vm858_vm4, %v852_v42, 0 }
 0x25e   :  { %1318 = vmatpush3.bf16.msra.mxu0 %v906_v44  ;;  %v952_v45 = vsel %vm858_vm4, %v853_v43, 0 }
 0x25f   :  { %1324 = vmatpush3.bf16.msra.mxu1 %v952_v45  ;;  %1329 = vmatprep.subr.bf16.mxu0 %v1388_v6  ;;  %v1112_v45 = vlaneseq }
 0x260   :  { %v1369_v47 = vpop.eup %1368 }
 0x261   :  { %1320 = vmatmul.mubr.msk.bf16.vlgmr.msra.gmra.mrb[24].mxu0 %vm724_vm3, %v848_v46  ;;  %v846_v49 = vmul.f32 %v1369_v47, %v1310_v23 }
 0x262   :  { %1326 = vmatmul.mubr.msk.bf16.vlgmr.msra.gmra.mrb[28].mxu1 %vm724_vm3, %v849_v48  ;;  %1331 = vmatprep.mubr.msk.bf16.mxu0 %vm1387_vm0, %v1388_v6  ;;  %v1172_v6 = vld [vmem:[%s1617_s6] ss:$0 sm:$0xff]  ;;  %v1113_v48 = vand.u32 127, %v1112_v45 }
 0x263   :  { %v854_v50 = vpack.c.bf16 %v846_v49, %v846_v49 }
 0x265   :  { %v998_v51 = vsel %vm858_vm4, %v854_v50, 0 }
 0x266   :  { %1330 = vmatpush3.bf16.msra.mxu0 %v998_v51 }
 0x269   :  { %1332 = vmatmul.mubr.msk.bf16.vlgmr.msra.gmra.mrb[28].mxu0 %vm724_vm3, %v850_v52 }
 0x32d   :  { %v896_v53 = vpop.f32.mrb[24].mxu1 }
 0x32e   :  { %v897_v54 = vadd.f32 %v896_v53, %v843_v32  ;;  %v1315_v55 = vpop.f32.mrb[25].mxu1 }
 0x32f   :  { %v899_v57 = vpop.f32.mrb[26].mxu1 }
 0x330   :  { %v1040_v58 = vmul.f32 %v1363_v31, %v897_v54  ;;  %v1316_v59 = vpop.f32.mrb[27].mxu1 }
 0x332   :  { %v1050_v60 = vadd.f32 %v1171_v56, %v1040_v58 }
 0x334   :  { %v942_v61 = vpop.f32.mrb[24].mxu0  ;;  %v1054_v62 = vmax.f32 %v1050_v60, 0.0 }
 0x335   :  { %v943_v63 = vadd.f32 %v942_v61, %v844_v40  ;;  %v988_v0 = vpop.f32.mrb[28].mxu1  ;;  %v1321_v1 = vpop.f32.mrb[25].mxu0 }
 0x336   :  { %v989_v2 = vadd.f32 %v988_v0, %v845_v41  ;;  %v1327_v3 = vpop.f32.mrb[29].mxu1  ;;  %v945_v4 = vpop.f32.mrb[26].mxu0  ;;  %v1064_v5 = vmul.f32 %v1172_v6, %v1054_v62  ;;  %1104 = vst.msk [vmem:[%s1618_s7] sm:$0xff] %vm745_vm2, %v1054_v62 }
 0x337   :  { %v1041_v7 = vmul.f32 %v1365_v37, %v943_v63  ;;  %v991_v8 = vpop.f32.mrb[30].mxu1  ;;  %v1322_v9 = vpop.f32.mrb[27].mxu0 }
 0x338   :  { %v1042_v10 = vmul.f32 %v1367_v39, %v989_v2  ;;  %v1328_v11 = vpop.f32.mrb[31].mxu1  ;;  %v1068_v12 = vsel %vm745_vm2, %v1064_v5, 0.0 }
 0x339   :  { %v1051_v13 = vadd.f32 %v1171_v56, %v1041_v7  ;;  %1069 = vadd.xlane.f32.xlu0 %v1068_v12 }
 0x33a   :  { %v1052_v14 = vadd.f32 %v1171_v56, %v1042_v10 }
 0x33b   :  { %v1055_v15 = vmax.f32 %v1051_v13, 0.0 }
 0x33c   :  { %v1034_v16 = vpop.f32.mrb[28].mxu0  ;;  %v1056_v17 = vmax.f32 %v1052_v14, 0.0 }
 0x33d   :  { %v1035_v18 = vadd.f32 %v1034_v16, %v846_v49  ;;  %v1333_v19 = vpop.f32.mrb[29].mxu0  ;;  %v1065_v20 = vmul.f32 %v1172_v6, %v1055_v15  ;;  %1105 = vst.msk [vmem:[%s1618_s7 + $0x8] sm:$0xff] %vm745_vm2, %v1055_v15  ;;  %v1115_v49 = vshrl.u32 %v1112_v45, 7 }
 0x33e   :  { %v1037_v21 = vpop.f32.mrb[30].mxu0  ;;  %v1066_v22 = vmul.f32 %v1172_v6, %v1056_v17  ;;  %1106 = vst.msk [vmem:[%s1618_s7 + $0x10] sm:$0xff] %vm745_vm2, %v1056_v17 }
 0x33f   :  { %v1043_v23 = vmul.f32 %v1369_v47, %v1035_v18  ;;  %v1334_v24 = vpop.f32.mrb[31].mxu0  ;;  %v1071_v25 = vsel %vm745_vm2, %v1065_v20, 0.0  ;;  %v1116_v51 = vsub.s32 %v1113_v48, %v1115_v49 }
 0x340   :  { %1072 = vadd.xlane.f32.xlu1 %v1071_v25  ;;  %v1074_v26 = vsel %vm745_vm2, %v1066_v22, 0.0 }
 0x341   :  { %v1053_v27 = vadd.f32 %v1171_v56, %v1043_v23  ;;  %1075 = vadd.xlane.f32.xlu0 %v1074_v26 }
 0x343   :  { %v1057_v28 = vmax.f32 %v1053_v27, 0.0 }
 0x345   :  { %v1067_v29 = vmul.f32 %v1172_v6, %v1057_v28  ;;  %1107 = vst.msk [vmem:[%s1618_s7 + $0x18] sm:$0xff] %vm745_vm2, %v1057_v28 }
 0x347   :  { %v1077_v30 = vsel %vm745_vm2, %v1067_v29, 0.0 }
 0x348   :  { %1078 = vadd.xlane.f32.xlu1 %v1077_v30 }
 0x3c6   :  { %v1070_v31 = vpop.xlane.xlu0 %1069 }
 0x3c7   :  { %v1173_v32 = vmul.f32 -1.442695, %v1070_v31 }
 0x3c9   :  { %1370 = vpow2.f32 %v1173_v32 }
 0x3cd   :  { %v1073_v33 = vpop.xlane.xlu1 %1072 }
 0x3ce   :  { %v1174_v34 = vmul.f32 -1.442695, %v1073_v33  ;;  %v1076_v35 = vpop.xlane.xlu0 %1075 }
 0x3cf   :  { %v1175_v36 = vmul.f32 -1.442695, %v1076_v35 }
 0x3d0   :  { %1372 = vpow2.f32 %v1174_v34 }
 0x3d1   :  { %1374 = vpow2.f32 %v1175_v36 }
 0x3d3   :  { %v1371_v39 = vpop.eup %1370 }
 0x3d4   :  { %v1092_v42 = vadd.f32 1.0, %v1371_v39 }
 0x3d5   :  { %v1079_v37 = vpop.xlane.xlu1 %1078 }
 0x3d6   :  { %v1176_v38 = vmul.f32 -1.442695, %v1079_v37 }
 0x3d8   :  { %1376 = vpow2.f32 %v1176_v38 }
 0x3da   :  { %v1373_v40 = vpop.eup %1372 }
 0x3db   :  { %v1375_v41 = vpop.eup %1374  ;;  %v1093_v43 = vadd.f32 1.0, %v1373_v40 }
 0x3dc   :  { %v1094_v44 = vadd.f32 1.0, %v1375_v41 }
 0x3dd   :  { %1378 = vrcp.f32 %v1093_v43 }
 0x3de   :  { %1380 = vrcp.f32 %v1092_v42 }
 0x3df   :  { %1382 = vrcp.f32 %v1094_v44 }
 0x3e2   :  { %v1377_v46 = vpop.eup %1376 }
 0x3e3   :  { %v1095_v47 = vadd.f32 1.0, %v1377_v46 }
 0x3e5   :  { %1384 = vrcp.f32 %v1095_v47 }
 0x3e7   :  { %v1379_v50 = vpop.eup %1378 }
 0x3e8   :  { %v1381_v52 = vpop.eup %1380  ;;  %v1121_v54 = vrot.slane %v1379_v50, %v1116_v51 }
 0x3e9   :  { %v1383_v53 = vpop.eup %1382  ;;  %v1117_v55 = vrot.slane %v1381_v52, %v1116_v51 }
 0x3ea   :  { %v1125_v56 = vrot.slane %v1383_v53, %v1116_v51 }
 0x3eb   :  { %v1131_v57 = vsel %vm1130_vm5, %v1121_v54, %v1117_v55 }
 0x3ec   :  { %v1133_v60 = vsel %vm1132_vm6, %v1125_v56, %v1131_v57 }
 0x3ef   :  { %v1385_v58 = vpop.eup %1384 }
 0x3f0   :  { %v1129_v59 = vrot.slane %v1385_v58, %v1116_v51 }
 0x3f2   :  { %v1135_v6 = vsel %vm1134_vm7, %v1129_v59, %v1133_v60 }
 0x3f3   :  { %1138 = vst.msk [vmem:[%s1619_s8] sm:$0xf] %vm1137_vm8, %v1135_v6 }

</bundles_post_ra>
